<compile_context>
chip_gen: v7x
topology: tpu7x:2x2x1
jax: 0.10.0
libtpu: 0.0.40
codegen_flags: <defaults>
</compile_context>

<pallas_src>
import functools

import jax
import jax.numpy as jnp
from jax.experimental import pallas as pl
from jax.experimental.pallas import tpu as pltpu

LN_EPS = 1e-5


def _single_core_chip():
    """True for known single-TensorCore chips (v5e / v6e); conservative default False."""
    try:
        kind = jax.devices()[0].device_kind.lower()
    except Exception:
        return False
    return any(t in kind for t in ("v5 lite", "v5e", "v5litepod", "v6 lite", "v6e"))


# =====================================================================================
# Fused token_decoder kernel (one grid step = one batch slab of bp batches)
# =====================================================================================

def _token_decoder_kernel(heads, bp,
                          x_ref, pos_ref, m_ref,
                          cols_ref, rows_ref,
                          wq_ref, wkv_ref, w1_ref, b1_ref, w2_ref,
                          o_ref):
    bf16 = jnp.bfloat16
    C, TN = x_ref.shape
    N = TN // bp
    Nm = m_ref.shape[0] // bp
    H = heads

    # ---- unpack the stacked small parameters (static slices of one loaded block) ----
    cols = cols_ref[...]                          # (C, 6+H) f32: ln1w ln1b ln2w ln2b bo b2 | Wo
    ln1w_c, ln1b_c = cols[:, 0:1], cols[:, 1:2]
    ln2w_c, ln2b_c = cols[:, 2:3], cols[:, 3:4]
    bo_c, b2_c = cols[:, 4:5], cols[:, 5:6]
    wo = cols[:, 6:6 + H]                         # (C, H) rank-1 output projection
    rows = rows_ref[...]                          # (2, C): ln1 weight / bias (row layout for m)
    ln1w_r, ln1b_r = rows[0:1, :], rows[1:2, :]

    # ---- fused positional-embedding add (channel-major, lane-dense) ----
    xp = x_ref[...] + pos_ref[...]                # (C, TN)

    # ---- PreNorm2: one shared LayerNorm applied to query tokens (x) and memory (m) ----
    def ln_cols(t, w, b):                         # normalize over channel axis 0
        mu = jnp.mean(t, axis=0, keepdims=True)
        var = jnp.mean((t - mu) ** 2, axis=0, keepdims=True)
        return (t - mu) * jax.lax.rsqrt(var + LN_EPS) * w + b

    def ln_rows(t, w, b):                         # normalize over channel axis -1
        mu = jnp.mean(t, axis=-1, keepdims=True)
        var = jnp.mean((t - mu) ** 2, axis=-1, keepdims=True)
        return (t - mu) * jax.lax.rsqrt(var + LN_EPS) * w + b

    xn = ln_cols(xp, ln1w_c, ln1b_c)              # (C, TN)
    mn = ln_rows(m_ref[...], ln1w_r, ln1b_r)      # (bp*Nm, C)

    # ---- projections: bf16 weights (pre-cast in wrapper), f32 accumulation on MXU ----
    # scale is pre-folded into wq; Wk/Wv fused into one matmul.
    q = jnp.dot(wq_ref[...], xn.astype(bf16),
                preferred_element_type=jnp.float32)            # (H, TN)
    kv = jnp.dot(mn.astype(bf16), wkv_ref[...],
                 preferred_element_type=jnp.float32)           # (bp*Nm, 2H)
    k = kv[:, :H]
    v = kv[:, H:2 * H]

    # ---- rank-1 cross-attention (dim_head == 1), all heads batched per batch slab ----
    oh_parts = []
    for b in range(bp):                                         # bp is tiny (1 or 2), unrolled
        kb = k[b * Nm:(b + 1) * Nm, :]                          # (Nm, H)
        vb = v[b * Nm:(b + 1) * Nm, :]                          # (Nm, H)
        qb = q[:, b * N:(b + 1) * N]                            # (H, N)   (N multiple of 128)
        logits = kb[:, :, None] * qb[None, :, :]                # (Nm, H, N)  all heads at once
        mx = jnp.max(logits, axis=0, keepdims=True)
        e = jnp.exp(logits - mx)
        attn = e / jnp.sum(e, axis=0, keepdims=True)            # exact division for parity
        oh_parts.append(jnp.sum(attn * vb[:, :, None], axis=0))  # (H, N)
    oh = oh_parts[0] if bp == 1 else jnp.concatenate(oh_parts, axis=1)   # (H, TN)

    a1 = xp + bo_c                                              # residual + out-proj bias
    for h in range(H):
        a1 = a1 + wo[:, h:h + 1] * oh[h:h + 1, :]               # rank-1 VPU output projection

    # ---- PreNorm + FeedForward + residual, fused ----
    a1n = ln_cols(a1, ln2w_c, ln2b_c)
    hdn = jnp.dot(w1_ref[...], a1n.astype(bf16),
                  preferred_element_type=jnp.float32) + b1_ref[...]      # (2C, TN)
    # TODO(synk): torch nn.GELU is exact-erf; tanh-approximate GELU used for Mosaic lowering.
    hdn = jax.nn.gelu(hdn, approximate=True)
    y2 = jnp.dot(w2_ref[...], hdn.astype(bf16),
                 preferred_element_type=jnp.float32) + b2_c              # (C, TN)
    o_ref[...] = a1 + y2


@functools.lru_cache(maxsize=None)
def _token_decoder_call(nsteps, C, TN, NMB, heads, bp):
    kernel = functools.partial(_token_decoder_kernel, heads, bp)

    def fixed(shape):                                            # grid-invariant operand
        return pl.BlockSpec(shape, lambda i: (0, 0))

    return pl.pallas_call(
        kernel,
        grid=(nsteps,),
        out_shape=jax.ShapeDtypeStruct((nsteps, C, TN), jnp.float32),
        in_specs=[
            pl.BlockSpec((None, C, TN), lambda i: (i, 0, 0)),    # x slab (channel-major)
            pl.BlockSpec((C, TN), lambda i: (0, 0)),             # pos (broadcast over steps)
            pl.BlockSpec((None, NMB, C), lambda i: (i, 0, 0)),   # memory tokens slab
            fixed((C, 6 + heads)),                               # packed col vecs + Wo   (f32)
            fixed((2, C)),                                       # packed ln1 row layout  (f32)
            fixed((heads, C)),                                   # Wq * scale             (bf16)
            fixed((C, 2 * heads)),                               # Wk|Wv fused            (bf16)
            fixed((2 * C, C)),                                   # W1                     (bf16)
            fixed((2 * C, 1)),                                   # b1                     (f32)
            fixed((C, 2 * C)),                                   # W2                     (bf16)
        ],
        out_specs=pl.BlockSpec((None, C, TN), lambda i: (i, 0, 0)),
        compiler_params=pltpu.CompilerParams(
            dimension_semantics=("parallel",),
            vmem_limit_bytes=32 * 1024 * 1024),
    )


# =====================================================================================
# Parameters and module wrapper
# =====================================================================================

class ParamGen:
    def __init__(self, seed=0):
        self._key = jax.random.PRNGKey(seed)
        self._n = 0

    def normal(self, shape, scale=0.1):
        self._n += 1
        k = jax.random.fold_in(self._key, self._n)
        return scale * jax.random.normal(k, shape, jnp.float32)


class TokenDecoder:
    """token_decoder: pos-embed add + 1-layer TransformerDecoder (cross-attn + FFN)."""

    def __init__(self, pg, in_chan=32, size=32, heads=4):
        C = in_chan
        self.C, self.size, self.heads = C, size, heads
        self.dim_head = 1                        # dim_head=True in the source -> 1
        self.inner = heads * self.dim_head       # inner_dim == heads
        self.scale = float(C) ** -0.5            # Cross_Attention: scale = dim ** -0.5

        # ---- f32 reference parameters (mirror the PyTorch module) ----
        self.pos = pg.normal((C, size * size), 1.0)      # nn.Parameter(randn(1,C,H,W)) flat
        self.ln1_w = jnp.ones((C,), jnp.float32)         # PreNorm2 shared LayerNorm
        self.ln1_b = jnp.zeros((C,), jnp.float32)
        self.wq = pg.normal((self.inner, C), 0.1)        # q/k/v bias-free; to_out has bias
        self.wk = pg.normal((C, self.inner), 0.1)
        self.wv = pg.normal((C, self.inner), 0.1)
        self.wo = pg.normal((C, self.inner), 0.1)
        self.bo = pg.normal((C,), 0.01)
        self.ln2_w = jnp.ones((C,), jnp.float32)         # PreNorm LayerNorm for FFN branch
        self.ln2_b = jnp.zeros((C,), jnp.float32)
        self.w1 = pg.normal((2 * C, C), 0.1)             # Linear(C, 2C)
        self.b1 = pg.normal((2 * C,), 0.01)
        self.w2 = pg.normal((C, 2 * C), 0.1)             # Linear(2C, C)
        self.b2 = pg.normal((C,), 0.01)

        # ---- kernel-side packed / pre-cast parameters (built once, kept in HBM) ----
        self._wq = (self.wq * self.scale).astype(jnp.bfloat16)           # scale folded, bf16
        self._wkv = jnp.concatenate([self.wk, self.wv], 1).astype(jnp.bfloat16)
        self._w1 = self.w1.astype(jnp.bfloat16)
        self._w2 = self.w2.astype(jnp.bfloat16)
        self._b1 = self.b1.reshape(2 * C, 1)
        self._cols = jnp.concatenate(
            [jnp.stack([self.ln1_w, self.ln1_b, self.ln2_w, self.ln2_b,
                        self.bo, self.b2], axis=1),
             self.wo], axis=1)                                            # (C, 6+heads)
        self._rows = jnp.stack([self.ln1_w, self.ln1_b], axis=0)          # (2, C)

    def _batches_per_step(self, B, N):
        # Single-TC chips (v5e/v6e): fold batch into lanes -> one grid step (amortize MXU
        # weight pushes, drop per-step pipeline overhead).  Multi-core chips (v7x): keep
        # one batch per step so both TensorCores get "parallel" work.  Slab lane width is
        # capped so large reuse shapes stay within VMEM / vreg budget.
        if _single_core_chip():
            cap = 1024
            for cand in range(B, 0, -1):
                if B % cand == 0 and cand * N <= cap:
                    return cand
        return 1

    def __call__(self, x, m):
        # x: (B, C, H, W) NCHW (PyTorch layout);  m: (B, Nm, C) memory tokens ('b l c')
        B, C, Hs, Ws = x.shape
        N = Hs * Ws
        Nm = m.shape[1]
        assert C == self.C and Hs == self.size and Ws == self.size

        bp = self._batches_per_step(B, N)
        nsteps = B // bp
        TN = bp * N

        xt = x.reshape(B, C, N).astype(jnp.float32)          # 'b c h w -> b c (h w)' (free)
        if bp > 1:                                            # fold bp batches into lanes
            xt = jnp.transpose(xt.reshape(nsteps, bp, C, N), (0, 2, 1, 3)).reshape(
                nsteps, C, TN)
        pos = self.pos if bp == 1 else jnp.tile(self.pos, (1, bp))        # (C, TN)
        mt = m.astype(jnp.float32).reshape(nsteps, bp * Nm, C)

        out = _token_decoder_call(nsteps, C, TN, bp * Nm, self.heads, bp)(
            xt, pos, mt,
            self._cols, self._rows,
            self._wq, self._wkv, self._w1, self._b1, self._w2)

        if bp > 1:                                            # unfold lanes back to batch
            out = jnp.transpose(out.reshape(nsteps, C, bp, N), (0, 2, 1, 3))
        return out.reshape(B, C, Hs, Ws)                      # 'b c (h w) -> b c h w'


# =====================================================================================
# Pure-JAX reference (token-major, mirrors the PyTorch ops) for the correctness check
# =====================================================================================

def _reference_forward(model, x, m):
    B, C, Hs, Ws = x.shape
    N = Hs * Ws
    xt = x.reshape(B, C, N).astype(jnp.float32) + model.pos       # (B,C,N) + (C,N)
    xt = jnp.transpose(xt, (0, 2, 1))                             # (B, N, C)

    def ln(t, w, b):
        mu = jnp.mean(t, -1, keepdims=True)
        var = jnp.mean((t - mu) ** 2, -1, keepdims=True)
        return (t - mu) * jax.lax.rsqrt(var + LN_EPS) * w + b

    xn = ln(xt, model.ln1_w, model.ln1_b)
    mn = ln(m.astype(jnp.float32), model.ln1_w, model.ln1_b)
    q = jnp.einsum('bnc,hc->bnh', xn, model.wq) * model.scale
    k = jnp.einsum('bmc,ch->bmh', mn, model.wk)
    v = jnp.einsum('bmc,ch->bmh', mn, model.wv)
    dots = jnp.einsum('bnh,bmh->bhnm', q, k)                      # dim_head = 1
    attn = jax.nn.softmax(dots, axis=-1)
    av = jnp.einsum('bhnm,bmh->bnh', attn, v)
    xt = xt + jnp.einsum('bnh,ch->bnc', av, model.wo) + model.bo

    xn2 = ln(xt, model.ln2_w, model.ln2_b)
    hdn = jax.nn.gelu(jnp.einsum('bnc,hc->bnh', xn2, model.w1) + model.b1,
                      approximate=True)
    xt = xt + jnp.einsum('bnh,ch->bnc', hdn, model.w2) + model.b2
    return jnp.transpose(xt, (0, 2, 1)).reshape(B, C, Hs, Ws)


# =====================================================================================
# Main
# =====================================================================================

if __name__ == "__main__":
    B, C, SIZE, NM, HEADS = 2, 32, 16, 8, 4

    pg = ParamGen(seed=0)
    model = TokenDecoder(pg, in_chan=C, size=SIZE, heads=HEADS)

    key = jax.random.PRNGKey(0)
    kx, km = jax.random.split(key)
    x = jax.random.normal(kx, (B, C, SIZE, SIZE), jnp.float32)   # NCHW, like PyTorch
    m = jax.random.normal(km, (B, NM, C), jnp.float32)           # memory tokens 'b l c'

    out = jax.block_until_ready(model(x, m))

    assert out.shape == (B, C, SIZE, SIZE), out.shape
    assert bool(jnp.all(jnp.isfinite(out)))

    # Numerical check vs the plain-JAX reference (bf16 MXU operands, f32 accumulation,
    # exact-division softmax -> tightened tolerance vs the previous 0.1).
    ref = _reference_forward(model, x, m)
    max_err = float(jnp.max(jnp.abs(out - ref)))
    assert max_err < 3e-2, max_err

    print("KERNEL_OK")
</pallas_src>

<mosaic_0001>
module attributes {stable_mosaic.version = 11 : i64} {
  func.func @_token_decoder_kernel(%arg0: i32, %arg1: memref<1x32x256xf32, #tpu.memory_space<vmem>>, %arg2: memref<32x256xf32, #tpu.memory_space<vmem>>, %arg3: memref<1x8x32xf32, #tpu.memory_space<vmem>>, %arg4: memref<32x10xf32, #tpu.memory_space<vmem>>, %arg5: memref<2x32xf32, #tpu.memory_space<vmem>>, %arg6: memref<4x32xbf16, #tpu.memory_space<vmem>>, %arg7: memref<32x8xbf16, #tpu.memory_space<vmem>>, %arg8: memref<64x32xbf16, #tpu.memory_space<vmem>>, %arg9: memref<64x1xf32, #tpu.memory_space<vmem>>, %arg10: memref<32x64xbf16, #tpu.memory_space<vmem>>, %arg11: memref<1x32x256xf32, #tpu.memory_space<vmem>>) attributes {dimension_semantics = [#tpu.dimension_semantics<parallel>], iteration_bounds = array<i64: 2>, scalar_prefetch = 0 : i64, scratch_operands = 0 : i64, tpu.core_type = #tpu.core_type<tc>, window_params = [{transform_indices = @transform_0, window_bounds = array<i64: 1, 32, 256>}, {pipeline_mode = #tpu.pipeline_mode<synchronous>, transform_indices = @transform_1, window_bounds = array<i64: 32, 256>}, {transform_indices = @transform_2, window_bounds = array<i64: 1, 8, 32>}, {pipeline_mode = #tpu.pipeline_mode<synchronous>, transform_indices = @transform_3, window_bounds = array<i64: 32, 10>}, {pipeline_mode = #tpu.pipeline_mode<synchronous>, transform_indices = @transform_4, window_bounds = array<i64: 2, 32>}, {pipeline_mode = #tpu.pipeline_mode<synchronous>, transform_indices = @transform_5, window_bounds = array<i64: 4, 32>}, {pipeline_mode = #tpu.pipeline_mode<synchronous>, transform_indices = @transform_6, window_bounds = array<i64: 32, 8>}, {pipeline_mode = #tpu.pipeline_mode<synchronous>, transform_indices = @transform_7, window_bounds = array<i64: 64, 32>}, {pipeline_mode = #tpu.pipeline_mode<synchronous>, transform_indices = @transform_8, window_bounds = array<i64: 64, 1>}, {pipeline_mode = #tpu.pipeline_mode<synchronous>, transform_indices = @transform_9, window_bounds = array<i64: 32, 64>}, {transform_indices = @transform_10, window_bounds = array<i64: 1, 32, 256>}]} {
    %c0 = arith.constant 0 : index
    %c0_0 = arith.constant 0 : index
    %0 = vector.load %arg4[%c0, %c0_0] : memref<32x10xf32, #tpu.memory_space<vmem>>, vector<32x10xf32>
    %1 = vector.extract_strided_slice %0 {offsets = [0, 0], sizes = [32, 1], strides = [1, 1]} : vector<32x10xf32> to vector<32x1xf32>
    %2 = vector.extract_strided_slice %0 {offsets = [0, 1], sizes = [32, 1], strides = [1, 1]} : vector<32x10xf32> to vector<32x1xf32>
    %3 = vector.extract_strided_slice %0 {offsets = [0, 2], sizes = [32, 1], strides = [1, 1]} : vector<32x10xf32> to vector<32x1xf32>
    %4 = vector.extract_strided_slice %0 {offsets = [0, 3], sizes = [32, 1], strides = [1, 1]} : vector<32x10xf32> to vector<32x1xf32>
    %5 = vector.extract_strided_slice %0 {offsets = [0, 4], sizes = [32, 1], strides = [1, 1]} : vector<32x10xf32> to vector<32x1xf32>
    %6 = vector.extract_strided_slice %0 {offsets = [0, 5], sizes = [32, 1], strides = [1, 1]} : vector<32x10xf32> to vector<32x1xf32>
    %7 = vector.extract_strided_slice %0 {offsets = [0, 6], sizes = [32, 4], strides = [1, 1]} : vector<32x10xf32> to vector<32x4xf32>
    %c0_1 = arith.constant 0 : index
    %c0_2 = arith.constant 0 : index
    %8 = vector.load %arg5[%c0_1, %c0_2] : memref<2x32xf32, #tpu.memory_space<vmem>>, vector<2x32xf32>
    %9 = vector.extract_strided_slice %8 {offsets = [0, 0], sizes = [1, 32], strides = [1, 1]} : vector<2x32xf32> to vector<1x32xf32>
    %10 = vector.extract_strided_slice %8 {offsets = [1, 0], sizes = [1, 32], strides = [1, 1]} : vector<2x32xf32> to vector<1x32xf32>
    %c0_3 = arith.constant 0 : index
    %c0_4 = arith.constant 0 : index
    %c0_5 = arith.constant 0 : index
    %11 = vector.load %arg1[%c0_3, %c0_4, %c0_5] : memref<1x32x256xf32, #tpu.memory_space<vmem>>, vector<1x32x256xf32>
    %12 = vector.shape_cast %11 : vector<1x32x256xf32> to vector<32x256xf32>
    %c0_6 = arith.constant 0 : index
    %c0_7 = arith.constant 0 : index
    %13 = vector.load %arg2[%c0_6, %c0_7] : memref<32x256xf32, #tpu.memory_space<vmem>>, vector<32x256xf32>
    %14 = arith.addf %12, %13 : vector<32x256xf32>
    %cst = arith.constant dense<0.000000e+00> : vector<256xf32>
    %15 = vector.multi_reduction <add>, %14, %cst [0] : vector<32x256xf32> to vector<256xf32>
    %16 = vector.shape_cast %15 : vector<256xf32> to vector<1x256xf32>
    %cst_8 = arith.constant 3.200000e+01 : f32
    %17 = vector.broadcast %cst_8 : f32 to vector<1x256xf32>
    %18 = arith.divf %16, %17 : vector<1x256xf32>
    %19 = vector.broadcast %18 : vector<1x256xf32> to vector<32x256xf32>
    %20 = arith.subf %14, %19 : vector<32x256xf32>
    %21 = arith.mulf %20, %20 : vector<32x256xf32>
    %cst_9 = arith.constant dense<0.000000e+00> : vector<256xf32>
    %22 = vector.multi_reduction <add>, %21, %cst_9 [0] : vector<32x256xf32> to vector<256xf32>
    %23 = vector.shape_cast %22 : vector<256xf32> to vector<1x256xf32>
    %cst_10 = arith.constant 3.200000e+01 : f32
    %24 = vector.broadcast %cst_10 : f32 to vector<1x256xf32>
    %25 = arith.divf %23, %24 : vector<1x256xf32>
    %26 = vector.broadcast %18 : vector<1x256xf32> to vector<32x256xf32>
    %27 = arith.subf %14, %26 : vector<32x256xf32>
    %cst_11 = arith.constant 9.99999974E-6 : f32
    %28 = vector.broadcast %cst_11 : f32 to vector<1x256xf32>
    %29 = arith.addf %25, %28 : vector<1x256xf32>
    %30 = math.rsqrt %29 : vector<1x256xf32>
    %31 = vector.broadcast %30 : vector<1x256xf32> to vector<32x256xf32>
    %32 = arith.mulf %27, %31 : vector<32x256xf32>
    %33 = vector.broadcast %1 : vector<32x1xf32> to vector<32x256xf32>
    %34 = arith.mulf %32, %33 : vector<32x256xf32>
    %35 = vector.broadcast %2 : vector<32x1xf32> to vector<32x256xf32>
    %36 = arith.addf %34, %35 : vector<32x256xf32>
    %c0_12 = arith.constant 0 : index
    %c0_13 = arith.constant 0 : index
    %c0_14 = arith.constant 0 : index
    %37 = vector.load %arg3[%c0_12, %c0_13, %c0_14] : memref<1x8x32xf32, #tpu.memory_space<vmem>>, vector<1x8x32xf32>
    %38 = vector.shape_cast %37 : vector<1x8x32xf32> to vector<8x32xf32>
    %cst_15 = arith.constant dense<0.000000e+00> : vector<8xf32>
    %39 = vector.multi_reduction <add>, %38, %cst_15 [1] : vector<8x32xf32> to vector<8xf32>
    %40 = vector.shape_cast %39 : vector<8xf32> to vector<8x1xf32>
    %cst_16 = arith.constant 3.200000e+01 : f32
    %41 = vector.broadcast %cst_16 : f32 to vector<8x1xf32>
    %42 = arith.divf %40, %41 : vector<8x1xf32>
    %43 = vector.broadcast %42 : vector<8x1xf32> to vector<8x32xf32>
    %44 = arith.subf %38, %43 : vector<8x32xf32>
    %45 = arith.mulf %44, %44 : vector<8x32xf32>
    %cst_17 = arith.constant dense<0.000000e+00> : vector<8xf32>
    %46 = vector.multi_reduction <add>, %45, %cst_17 [1] : vector<8x32xf32> to vector<8xf32>
    %47 = vector.shape_cast %46 : vector<8xf32> to vector<8x1xf32>
    %cst_18 = arith.constant 3.200000e+01 : f32
    %48 = vector.broadcast %cst_18 : f32 to vector<8x1xf32>
    %49 = arith.divf %47, %48 : vector<8x1xf32>
    %50 = vector.broadcast %42 : vector<8x1xf32> to vector<8x32xf32>
    %51 = arith.subf %38, %50 : vector<8x32xf32>
    %cst_19 = arith.constant 9.99999974E-6 : f32
    %52 = vector.broadcast %cst_19 : f32 to vector<8x1xf32>
    %53 = arith.addf %49, %52 : vector<8x1xf32>
    %54 = math.rsqrt %53 : vector<8x1xf32>
    %55 = vector.broadcast %54 : vector<8x1xf32> to vector<8x32xf32>
    %56 = arith.mulf %51, %55 : vector<8x32xf32>
    %57 = vector.broadcast %9 : vector<1x32xf32> to vector<8x32xf32>
    %58 = arith.mulf %56, %57 : vector<8x32xf32>
    %59 = vector.broadcast %10 : vector<1x32xf32> to vector<8x32xf32>
    %60 = arith.addf %58, %59 : vector<8x32xf32>
    %c0_20 = arith.constant 0 : index
    %c0_21 = arith.constant 0 : index
    %61 = vector.load %arg6[%c0_20, %c0_21] : memref<4x32xbf16, #tpu.memory_space<vmem>>, vector<4x32xbf16>
    %62 = arith.truncf %36 : vector<32x256xf32> to vector<32x256xbf16>
    %cst_22 = arith.constant dense<0.000000e+00> : vector<4x256xf32>
    %63 = tpu.matmul %61, %62, %cst_22 {dimension_numbers = #tpu.dot_dimension_numbers<[1], [0], [0], [1], [0, 0, 1, 1], [], []>} : vector<4x32xbf16>, vector<32x256xbf16>, vector<4x256xf32> -> vector<4x256xf32>
    %64 = arith.truncf %60 : vector<8x32xf32> to vector<8x32xbf16>
    %c0_23 = arith.constant 0 : index
    %c0_24 = arith.constant 0 : index
    %65 = vector.load %arg7[%c0_23, %c0_24] : memref<32x8xbf16, #tpu.memory_space<vmem>>, vector<32x8xbf16>
    %cst_25 = arith.constant dense<0.000000e+00> : vector<8x8xf32>
    %66 = tpu.matmul %64, %65, %cst_25 {dimension_numbers = #tpu.dot_dimension_numbers<[1], [0], [0], [1], [0, 0, 1, 1], [], []>} : vector<8x32xbf16>, vector<32x8xbf16>, vector<8x8xf32> -> vector<8x8xf32>
    %67 = vector.extract_strided_slice %66 {offsets = [0, 0], sizes = [8, 4], strides = [1, 1]} : vector<8x8xf32> to vector<8x4xf32>
    %68 = vector.extract_strided_slice %66 {offsets = [0, 4], sizes = [8, 4], strides = [1, 1]} : vector<8x8xf32> to vector<8x4xf32>
    %69 = vector.shape_cast %67 : vector<8x4xf32> to vector<8x4x1xf32>
    %70 = vector.shape_cast %63 : vector<4x256xf32> to vector<1x4x256xf32>
    %71 = vector.broadcast %69 : vector<8x4x1xf32> to vector<8x4x256xf32>
    %72 = vector.broadcast %70 : vector<1x4x256xf32> to vector<8x4x256xf32>
    %73 = arith.mulf %71, %72 : vector<8x4x256xf32>
    %cst_26 = arith.constant dense<0xFF800000> : vector<4x256xf32>
    %74 = vector.multi_reduction <maximumf>, %73, %cst_26 [0] : vector<8x4x256xf32> to vector<4x256xf32>
    %75 = vector.shape_cast %74 : vector<4x256xf32> to vector<1x4x256xf32>
    %76 = vector.broadcast %75 : vector<1x4x256xf32> to vector<8x4x256xf32>
    %77 = arith.subf %73, %76 : vector<8x4x256xf32>
    %78 = math.exp %77 : vector<8x4x256xf32>
    %cst_27 = arith.constant dense<0.000000e+00> : vector<4x256xf32>
    %79 = vector.multi_reduction <add>, %78, %cst_27 [0] : vector<8x4x256xf32> to vector<4x256xf32>
    %80 = vector.shape_cast %79 : vector<4x256xf32> to vector<1x4x256xf32>
    %81 = vector.broadcast %80 : vector<1x4x256xf32> to vector<8x4x256xf32>
    %82 = arith.divf %78, %81 : vector<8x4x256xf32>
    %83 = vector.shape_cast %68 : vector<8x4xf32> to vector<8x4x1xf32>
    %84 = vector.broadcast %83 : vector<8x4x1xf32> to vector<8x4x256xf32>
    %85 = arith.mulf %82, %84 : vector<8x4x256xf32>
    %cst_28 = arith.constant dense<0.000000e+00> : vector<4x256xf32>
    %86 = vector.multi_reduction <add>, %85, %cst_28 [0] : vector<8x4x256xf32> to vector<4x256xf32>
    %87 = vector.broadcast %5 : vector<32x1xf32> to vector<32x256xf32>
    %88 = arith.addf %14, %87 : vector<32x256xf32>
    %89 = vector.extract_strided_slice %7 {offsets = [0, 0], sizes = [32, 1], strides = [1, 1]} : vector<32x4xf32> to vector<32x1xf32>
    %90 = vector.extract_strided_slice %86 {offsets = [0, 0], sizes = [1, 256], strides = [1, 1]} : vector<4x256xf32> to vector<1x256xf32>
    %91 = vector.broadcast %89 : vector<32x1xf32> to vector<32x256xf32>
    %92 = vector.broadcast %90 : vector<1x256xf32> to vector<32x256xf32>
    %93 = arith.mulf %91, %92 : vector<32x256xf32>
    %94 = arith.addf %88, %93 : vector<32x256xf32>
    %95 = vector.extract_strided_slice %7 {offsets = [0, 1], sizes = [32, 1], strides = [1, 1]} : vector<32x4xf32> to vector<32x1xf32>
    %96 = vector.extract_strided_slice %86 {offsets = [1, 0], sizes = [1, 256], strides = [1, 1]} : vector<4x256xf32> to vector<1x256xf32>
    %97 = vector.broadcast %95 : vector<32x1xf32> to vector<32x256xf32>
    %98 = vector.broadcast %96 : vector<1x256xf32> to vector<32x256xf32>
    %99 = arith.mulf %97, %98 : vector<32x256xf32>
    %100 = arith.addf %94, %99 : vector<32x256xf32>
    %101 = vector.extract_strided_slice %7 {offsets = [0, 2], sizes = [32, 1], strides = [1, 1]} : vector<32x4xf32> to vector<32x1xf32>
    %102 = vector.extract_strided_slice %86 {offsets = [2, 0], sizes = [1, 256], strides = [1, 1]} : vector<4x256xf32> to vector<1x256xf32>
    %103 = vector.broadcast %101 : vector<32x1xf32> to vector<32x256xf32>
    %104 = vector.broadcast %102 : vector<1x256xf32> to vector<32x256xf32>
    %105 = arith.mulf %103, %104 : vector<32x256xf32>
    %106 = arith.addf %100, %105 : vector<32x256xf32>
    %107 = vector.extract_strided_slice %7 {offsets = [0, 3], sizes = [32, 1], strides = [1, 1]} : vector<32x4xf32> to vector<32x1xf32>
    %108 = vector.extract_strided_slice %86 {offsets = [3, 0], sizes = [1, 256], strides = [1, 1]} : vector<4x256xf32> to vector<1x256xf32>
    %109 = vector.broadcast %107 : vector<32x1xf32> to vector<32x256xf32>
    %110 = vector.broadcast %108 : vector<1x256xf32> to vector<32x256xf32>
    %111 = arith.mulf %109, %110 : vector<32x256xf32>
    %112 = arith.addf %106, %111 : vector<32x256xf32>
    %cst_29 = arith.constant dense<0.000000e+00> : vector<256xf32>
    %113 = vector.multi_reduction <add>, %112, %cst_29 [0] : vector<32x256xf32> to vector<256xf32>
    %114 = vector.shape_cast %113 : vector<256xf32> to vector<1x256xf32>
    %cst_30 = arith.constant 3.200000e+01 : f32
    %115 = vector.broadcast %cst_30 : f32 to vector<1x256xf32>
    %116 = arith.divf %114, %115 : vector<1x256xf32>
    %117 = vector.broadcast %116 : vector<1x256xf32> to vector<32x256xf32>
    %118 = arith.subf %112, %117 : vector<32x256xf32>
    %119 = arith.mulf %118, %118 : vector<32x256xf32>
    %cst_31 = arith.constant dense<0.000000e+00> : vector<256xf32>
    %120 = vector.multi_reduction <add>, %119, %cst_31 [0] : vector<32x256xf32> to vector<256xf32>
    %121 = vector.shape_cast %120 : vector<256xf32> to vector<1x256xf32>
    %cst_32 = arith.constant 3.200000e+01 : f32
    %122 = vector.broadcast %cst_32 : f32 to vector<1x256xf32>
    %123 = arith.divf %121, %122 : vector<1x256xf32>
    %124 = vector.broadcast %116 : vector<1x256xf32> to vector<32x256xf32>
    %125 = arith.subf %112, %124 : vector<32x256xf32>
    %cst_33 = arith.constant 9.99999974E-6 : f32
    %126 = vector.broadcast %cst_33 : f32 to vector<1x256xf32>
    %127 = arith.addf %123, %126 : vector<1x256xf32>
    %128 = math.rsqrt %127 : vector<1x256xf32>
    %129 = vector.broadcast %128 : vector<1x256xf32> to vector<32x256xf32>
    %130 = arith.mulf %125, %129 : vector<32x256xf32>
    %131 = vector.broadcast %3 : vector<32x1xf32> to vector<32x256xf32>
    %132 = arith.mulf %130, %131 : vector<32x256xf32>
    %133 = vector.broadcast %4 : vector<32x1xf32> to vector<32x256xf32>
    %134 = arith.addf %132, %133 : vector<32x256xf32>
    %c0_34 = arith.constant 0 : index
    %c0_35 = arith.constant 0 : index
    %135 = vector.load %arg8[%c0_34, %c0_35] : memref<64x32xbf16, #tpu.memory_space<vmem>>, vector<64x32xbf16>
    %136 = arith.truncf %134 : vector<32x256xf32> to vector<32x256xbf16>
    %cst_36 = arith.constant dense<0.000000e+00> : vector<64x256xf32>
    %137 = tpu.matmul %135, %136, %cst_36 {dimension_numbers = #tpu.dot_dimension_numbers<[1], [0], [0], [1], [0, 0, 1, 1], [], []>} : vector<64x32xbf16>, vector<32x256xbf16>, vector<64x256xf32> -> vector<64x256xf32>
    %c0_37 = arith.constant 0 : index
    %c0_38 = arith.constant 0 : index
    %138 = vector.load %arg9[%c0_37, %c0_38] : memref<64x1xf32, #tpu.memory_space<vmem>>, vector<64x1xf32>
    %139 = vector.broadcast %138 : vector<64x1xf32> to vector<64x256xf32>
    %140 = arith.addf %137, %139 : vector<64x256xf32>
    %141 = arith.mulf %140, %140 : vector<64x256xf32>
    %142 = arith.mulf %140, %141 : vector<64x256xf32>
    %cst_39 = arith.constant 4.471500e-02 : f32
    %143 = vector.broadcast %cst_39 : f32 to vector<64x256xf32>
    %144 = arith.mulf %143, %142 : vector<64x256xf32>
    %145 = arith.addf %140, %144 : vector<64x256xf32>
    %cst_40 = arith.constant 0.797884583 : f32
    %146 = vector.broadcast %cst_40 : f32 to vector<64x256xf32>
    %147 = arith.mulf %146, %145 : vector<64x256xf32>
    %148 = math.tanh %147 : vector<64x256xf32>
    %cst_41 = arith.constant 1.000000e+00 : f32
    %149 = vector.broadcast %cst_41 : f32 to vector<64x256xf32>
    %150 = arith.addf %149, %148 : vector<64x256xf32>
    %cst_42 = arith.constant 5.000000e-01 : f32
    %151 = vector.broadcast %cst_42 : f32 to vector<64x256xf32>
    %152 = arith.mulf %151, %150 : vector<64x256xf32>
    %153 = arith.mulf %140, %152 : vector<64x256xf32>
    %c0_43 = arith.constant 0 : index
    %c0_44 = arith.constant 0 : index
    %154 = vector.load %arg10[%c0_43, %c0_44] : memref<32x64xbf16, #tpu.memory_space<vmem>>, vector<32x64xbf16>
    %155 = arith.truncf %153 : vector<64x256xf32> to vector<64x256xbf16>
    %cst_45 = arith.constant dense<0.000000e+00> : vector<32x256xf32>
    %156 = tpu.matmul %154, %155, %cst_45 {dimension_numbers = #tpu.dot_dimension_numbers<[1], [0], [0], [1], [0, 0, 1, 1], [], []>} : vector<32x64xbf16>, vector<64x256xbf16>, vector<32x256xf32> -> vector<32x256xf32>
    %157 = vector.broadcast %6 : vector<32x1xf32> to vector<32x256xf32>
    %158 = arith.addf %156, %157 : vector<32x256xf32>
    %159 = arith.addf %112, %158 : vector<32x256xf32>
    %c0_46 = arith.constant 0 : index
    %c0_47 = arith.constant 0 : index
    %c0_48 = arith.constant 0 : index
    %160 = vector.load %arg11[%c0_46, %c0_47, %c0_48] : memref<1x32x256xf32, #tpu.memory_space<vmem>>, vector<1x32x256xf32>
    %161 = vector.shape_cast %160 : vector<1x32x256xf32> to vector<32x256xf32>
    %162 = vector.shape_cast %159 : vector<32x256xf32> to vector<1x32x256xf32>
    tpu.vector_store %arg11[%c0_46, %c0_47, %c0_48], %162 {strides = array<i32>} : memref<1x32x256xf32, #tpu.memory_space<vmem>>, vector<1x32x256xf32>,
    return
  }
  func.func @transform_0(%arg0: i32) -> (i32, i32, i32) {
    %c0_i32 = arith.constant 0 : i32
    %c0_i32_0 = arith.constant 0 : i32
    %c0_i32_1 = arith.constant 0 : i32
    return %arg0, %c0_i32, %c0_i32_0 : i32, i32, i32
  }
  func.func @transform_1(%arg0: i32) -> (i32, i32) {
    %c0_i32 = arith.constant 0 : i32
    %c0_i32_0 = arith.constant 0 : i32
    %c0_i32_1 = arith.constant 0 : i32
    return %c0_i32, %c0_i32_0 : i32, i32
  }
  func.func @transform_2(%arg0: i32) -> (i32, i32, i32) {
    %c0_i32 = arith.constant 0 : i32
    %c0_i32_0 = arith.constant 0 : i32
    %c0_i32_1 = arith.constant 0 : i32
    return %arg0, %c0_i32, %c0_i32_0 : i32, i32, i32
  }
  func.func @transform_3(%arg0: i32) -> (i32, i32) {
    %c0_i32 = arith.constant 0 : i32
    %c0_i32_0 = arith.constant 0 : i32
    %c0_i32_1 = arith.constant 0 : i32
    return %c0_i32, %c0_i32_0 : i32, i32
  }
  func.func @transform_4(%arg0: i32) -> (i32, i32) {
    %c0_i32 = arith.constant 0 : i32
    %c0_i32_0 = arith.constant 0 : i32
    %c0_i32_1 = arith.constant 0 : i32
    return %c0_i32, %c0_i32_0 : i32, i32
  }
  func.func @transform_5(%arg0: i32) -> (i32, i32) {
    %c0_i32 = arith.constant 0 : i32
    %c0_i32_0 = arith.constant 0 : i32
    %c0_i32_1 = arith.constant 0 : i32
    return %c0_i32, %c0_i32_0 : i32, i32
  }
  func.func @transform_6(%arg0: i32) -> (i32, i32) {
    %c0_i32 = arith.constant 0 : i32
    %c0_i32_0 = arith.constant 0 : i32
    %c0_i32_1 = arith.constant 0 : i32
    return %c0_i32, %c0_i32_0 : i32, i32
  }
  func.func @transform_7(%arg0: i32) -> (i32, i32) {
    %c0_i32 = arith.constant 0 : i32
    %c0_i32_0 = arith.constant 0 : i32
    %c0_i32_1 = arith.constant 0 : i32
    return %c0_i32, %c0_i32_0 : i32, i32
  }
  func.func @transform_8(%arg0: i32) -> (i32, i32) {
    %c0_i32 = arith.constant 0 : i32
    %c0_i32_0 = arith.constant 0 : i32
    %c0_i32_1 = arith.constant 0 : i32
    return %c0_i32, %c0_i32_0 : i32, i32
  }
  func.func @transform_9(%arg0: i32) -> (i32, i32) {
    %c0_i32 = arith.constant 0 : i32
    %c0_i32_0 = arith.constant 0 : i32
    %c0_i32_1 = arith.constant 0 : i32
    return %c0_i32, %c0_i32_0 : i32, i32
  }
  func.func @transform_10(%arg0: i32) -> (i32, i32, i32) {
    %c0_i32 = arith.constant 0 : i32
    %c0_i32_0 = arith.constant 0 : i32
    %c0_i32_1 = arith.constant 0 : i32
    return %arg0, %c0_i32, %c0_i32_0 : i32, i32, i32
  }
}

</mosaic_0001>

<bundles_post_ra>
// kernel: tpu_custom_call.1
= control target key start
LH: loop header
LB: loop body
LE: loop exit
PB: predicated region body
PF: predicated region fallthrough
CT: control target
= control target key end

     0   :  { %15 = vsyncpa [#allocation3], 0  ;;  %s3062_s0 = inlined_call_operand.vmem [shape: f32[2,32,256], index: 0, kind: input, shape index: {}]   ;;  %s3063_s1 = inlined_call_operand.hbm [shape: f32[32,256], index: 1, kind: input, shape index: {}]   ;;  %s3064_s2 = inlined_call_operand.vmem [shape: f32[2,8,32], index: 2, kind: input, shape index: {}]   ;;  %s3065_s3 = inlined_call_operand.vmem [shape: f32[32,10], index: 3, kind: input, shape index: {}]   ;;  %s3066_s4 = inlined_call_operand.hbm [shape: f32[2,32], index: 4, kind: input, shape index: {}]   ;;  %s3067_s5 = inlined_call_operand.vmem [shape: bf16[4,32], index: 5, kind: input, shape index: {}]   ;;  %s3068_s6 = inlined_call_operand.vmem [shape: bf16[32,8], index: 6, kind: input, shape index: {}]   ;;  %s3069_s7 = inlined_call_operand.vmem [shape: bf16[64,32], index: 7, kind: input, shape index: {}]   ;;  %s3070_s8 = inlined_call_operand.vmem [shape: f32[64,1], index: 8, kind: input, shape index: {}]   ;;  %s3071_s9 = inlined_call_operand.vmem [shape: bf16[32,64], index: 9, kind: input, shape index: {}]   ;;  %s3072_s10 = inlined_call_operand.hbm [shape: f32[2,32,256], index: 10, kind: output, shape index: {}]  }
   0x1   :  { %16 = vsyncpa [#allocation6], 0 }
   0x2   :  { %17 = vsyncpa [#allocation4], 0 }
   0x3   :  { %19 = vsyncpa [#allocation4 + $0x1], 0  ;;  %s2245_s13 = smov 0   ;;  %s2247_s14 = smov 0  }
   0x4   :  { %s2249_s15 = smov 0   ;;  %s2251_s16 = smov 0  }
   0x5 LB: > { %3080 = sst [smem:[#allocation11_spill]] %s2165_s15  ;;  %s2266_s17 = sadd.s32 4294967295, %s2169_s16   ;;  %s2169_s16 = sphi %s2251_s16, %s3096_s16   ;;  %s2165_s15 = sphi %s2249_s15, %s3098_s15   ;;  %s2161_s14 = sphi %s2247_s14, %s3100_s14   ;;  %s2157_s13 = sphi %s2245_s13, %s3099_s13  }
   0x6   : > { %s1798_s18 = sadd.s32 4294967294, %s2169_s16   ;;  %s2270_s19 = sadd.s32 1, %s2169_s16  }
   0x7   : > { %3081 = sst [smem:[#allocation12_spill]] %s2270_s19  ;;  %s252_s20 = sadd.s32 1, %s2165_s15 }
   0x8   : > { %s249_s21 = ssub.s32 %s2169_s16, %s2270_s19  ;;  %p262_p0 = scmp.ne.s32.totalorder %s2165_s15, %s2161_s14 }
   0x9   : > { %p250_p1 = scmp.eq.s32.totalorder %s249_s21, 0  ;;  %p263_p2 = scmp.eq.s32.totalorder %s2266_s17, 1 }
   0xa   : > { %p268_p3 = scmp.ne.s32.totalorder %s2161_s14, %s2157_s13  ;;  %p269_p4 = scmp.eq.s32.totalorder %s1798_s18, 1 }
   0xb   : > { %s2281_s22 = scalar_select %p250_p1, %s2165_s15, %s252_s20  }
   0xc   : > { %p2283_p5 = por %p263_p2, %p262_p0  ;;  %p2287_p6 = por %p269_p4, %p268_p3 }
   0xd   : > { %3082 = sst [smem:[#allocation13_spill]] %s2281_s22  ;;  %p1799_p7 = scmp.ge.s32.totalorder %s2169_s16, 1 }
   0xe   : > { %s3083_s23 = scalar_select %p2283_p5, 1, 0 }
   0xf   : > { %s3084_s24 = scalar_select %p2287_p6, 1, 0 }
  0x10   : > { %p276_p8 = scmp.lt.s32.totalorder %s2169_s16, 3  ;;  %p3073_p9 = scmp.eq.s32.totalorder %s2266_s17, 0 }
  0x11   : > { %3085 = sst [smem:[#allocation14_spill]] %s3084_s24  ;;  %s2171_s26 = smov [#allocation2]  }
  0x12   : > { %p2294_p10 = pnand %p1799_p7, %p276_p8  ;;  %s288_s27 = sshll.u32 %s2171_s26, 4  ;;  %s289_s27 = int_to_ptr.vmem [resolvable:$true] %s288_s27 }
  0x13   : > { %s2172_s29 = smov [#allocation5]   ;;  %s2043_s18 = scalar_lea.hbm %s3063_s1, 1024 }
  0x14   : > { %s3086_s25 = scalar_select %p2294_p10, 1, 0 }
  0x15   : > { %p1854_p11 = pneg %p2294_p10  ;;  %s305_s30 = sshll.u32 %s2172_s29, 4  ;;  %s2306_s30 = int_to_ptr.vmem [resolvable:$true] %s305_s30 }
  0x16   : > { %p2044_p13 = scmp.ne.s32.totalorder %s3063_s1, %s2043_s18  ;;  %p2050_p3 = scmp.lt.u32.totalorder %s2043_s18, %s3063_s1 }
  0x17   : > { %p2302_p12 = pnand %p3073_p9, %p1854_p11 }
  0x19   : > { %p2045_p0 = pneg %p2302_p12 }
  0x1b   : > { %p2046_p1 = pnand %p2045_p0, %p2044_p13 }
  0x1d   : > { %p2047_p2 = pneg %p2046_p1 }
  0x1f   : > { %p2052_p4 = pnand %p2050_p3, %p2047_p2 }
  0x21   : > { %2055 = shalt.err (!%p2052_p4)
}
  0x22   : > { %s2056_s29 = scalar_lea.vmem %s289_s27, 1024  ;;  %p2064_p9 = scmp.lt.s32.totalorder %s289_s27, %s289_s27 }
  0x23   : > { %p2057_p7 = scmp.ne.s32.totalorder %s289_s27, %s2056_s29  ;;  %p2065_p6 = scmp.lt.s32.totalorder %s2056_s29, %s2056_s29 }
  0x25   : > { %p2059_p8 = pnand %p2057_p7, %p2045_p0  ;;  %p2066_p5 = por %p2065_p6, %p2064_p9 }
  0x27   : > { %p2060_p11 = pneg %p2059_p8 }
  0x29   : > { %p2067_p10 = pnand %p2066_p5, %p2060_p11 }
  0x2b   : > { %2070 = shalt.err (!%p2067_p10)
}
  0x2c   : > { %s2173_s11 = smov 256   ;;  %s2174_s12 = smov 16  }
  0x2d   : > { %1857 = dma.hbm_to_vmem [thread:$0]  (!%p2302_p12), %s3063_s1, 1024, %s289_s27, [#allocation3], %s2173_s11, %s2173_s11, %s2174_s12  }
  0x2e   : > { %s2071_s26 = scalar_lea.hbm %s3066_s4, 32 }
  0x2f   : > { %p2072_p13 = scmp.ne.s32.totalorder %s3066_s4, %s2071_s26  ;;  %p2078_p9 = scmp.lt.u32.totalorder %s2071_s26, %s3066_s4 }
  0x31   : > { %p2074_p5 = pnand %p2072_p13, %p2045_p0 }
  0x33   : > { %p2075_p6 = pneg %p2074_p5 }
  0x35   : > { %p2080_p10 = pnand %p2078_p9, %p2075_p6 }
  0x37   : > { %2083 = shalt.err (!%p2080_p10)
}
  0x38   : > { %s2084_s27 = scalar_lea.vmem %s2306_s30, 32  ;;  %p2092_p4 = scmp.lt.s32.totalorder %s2306_s30, %s2306_s30 }
  0x39   : > { %p2085_p1 = scmp.ne.s32.totalorder %s2306_s30, %s2084_s27  ;;  %p2093_p7 = scmp.lt.s32.totalorder %s2084_s27, %s2084_s27 }
  0x3b   : > { %p2087_p2 = pnand %p2085_p1, %p2045_p0  ;;  %p2094_p8 = por %p2093_p7, %p2092_p4 }
  0x3d   : > { %p2088_p3 = pneg %p2087_p2 }
  0x3f   : > { %p2095_p11 = pnand %p2094_p8, %p2088_p3 }
  0x41   : > { %2098 = shalt.err (!%p2095_p11)
}
  0x42   : > { %1860 = dma.hbm_to_vmem [thread:$0]  (!%p2302_p12), %s3066_s4, 32, %s2306_s30, [#allocation6]  }
  0x43   : > { %p3088_p13 = scmp.ne.s32.totalorder %s3086_s25, 0 }
  0x44   : > { %p3089_p5 = scmp.eq.s32.totalorder (!%p3088_p13), %s2266_s17, 0 }
  0x45   : > { %348 = sbr.rel (%p3088_p13) target bundleno = 1450 (0x5aa), region = 60 }
  0x4c   : > { %2144 = dma.done.wait (%p3089_p5), [#allocation3], 1024   ;;  %p3090_p0 = pmov %p3089_p5 }
  0x4e   : > { %2146 = vsyncadd (%p3090_p0), [#allocation3], 4294966272  ;;  %p3091_p6 = pmov %p3090_p0 }
  0x4f   : > { %p3092_p9 = pmov %p3090_p0 }
  0x50   : > { %2148 = dma.done.wait (%p3091_p6), [#allocation6], 32  }
  0x51   : > { %2150 = vsyncadd (%p3092_p9), [#allocation6], 4294967264  ;;  %p394_p10 = scmp.lt.s32.totalorder %s2266_s17, 1  ;;  %vm555_vm0 = vcmask 261120   ;;  %v2377_v2 = vld [vmem:[%s3065_s3] sm:$0xff]  ;;  %v2175_v3 = vmov 0  }
  0x52   : > { %1920 = vset.pattern.permute.xlu1 %v2175_v3  ;;  %v2176_v4 = vmov 1   ;;  %619 = vmatprep.mubr.bf16.mxu0 %v2175_v3  ;;  %v2385_v5 = vld [vmem:[%s3065_s3 + $0x8] sm:$0xff]  ;;  %v2392_v6 = vld [vmem:[%s3065_s3 + $0x10] sm:$0xff]  ;;  %v2399_v7 = vld [vmem:[%s3065_s3 + $0x18] sm:$0xff]  ;;  %v2177_v14 = vmov 0.0   ;;  %vm2178_vm1 = vmmov 0  }
  0x53   : > { %s2367_s24 = scalar_select %p394_p10, %s2266_s17, 1  ;;  %1921 = vset.pattern.permute.xlu0 %v2176_v4  ;;  %504 = vperm.xlu1 %1920, %v2377_v2   ;;  %v1953_v13 = vld [vmem:[%s3068_s6] sm:$0xff]   ;;  %v1954_v15 = vld [vmem:[%s3068_s6 + $0x8] sm:$0xff]   ;;  %v419_v26 = vld [vmem:[#allocation2 + $0x10] sm:$0xff]  ;;  %vm760_vm2 = vcmask 1043456   ;;  %vm1612_vm3 = vcmask 523264  }
  0x54   : > { %1836 = vmatprep.subr.bf16.mxu1 %v2177_v14  ;;  %1840 = vmatprep.mubr.msk.bf16.mxu1 %vm2178_vm1, %v2177_v14  ;;  %v417_v24 = vld [vmem:[#allocation2] sm:$0xff]  ;;  %v418_v25 = vld [vmem:[#allocation2 + $0x8] sm:$0xff]  ;;  %v420_v27 = vld [vmem:[#allocation2 + $0x18] sm:$0xff]  ;;  %s391_s19 = sand.u32 1, %s2161_s14   ;;  %p3093_p1 = scmp.ne.s32.totalorder %s3083_s23, 0 }
  0x55   : > { %s1809_s25 = sshll.u32 %s2367_s24, 3  ;;  %1837 = vmatpush3.bf16.msra.mxu1 %v1953_v13  ;;  %s1831_s30 = sshll.u32 %s2367_s24, 6  ;;  %v421_v29 = vld [vmem:[#allocation2 + $0x20] sm:$0xff]  ;;  %v422_v30 = vld [vmem:[#allocation2 + $0x28] sm:$0xff]  ;;  %v423_v31 = vld [vmem:[#allocation2 + $0x30] sm:$0xff] }
  0x56   : > { %s402_s11 = scalar_lea.vmem %s3064_s2, %s1809_s25  ;;  %1838 = vmatprep.subr.bf16.mxu1 %v2177_v14  ;;  %s398_s22 = scalar_lea.vmem %s3062_s0, %s1831_s30  ;;  %v424_v35 = vld [vmem:[#allocation2 + $0x38] sm:$0xff] }
  0x57   : > { %v554_v0 = vld [vmem:[%s402_s11] sm:$0xff]  ;;  %509 = vperm.xlu1 %1920, %v2385_v5   ;;  %v410_v17 = vld [vmem:[%s398_s22 + $0x8] sm:$0xff]  ;;  %v411_v18 = vld [vmem:[%s398_s22 + $0x10] sm:$0xff]  ;;  %s1806_s25 = sshll.u32 %s391_s19, 6  ;;  %s1832_s11 = sshll.u32 %s2266_s17, 10 }
  0x58   : > { %v556_v1 = vsel %vm555_vm0, %v554_v0, 0.0  ;;  %v409_v16 = vld [vmem:[%s398_s22] sm:$0xff]  ;;  %v412_v19 = vld [vmem:[%s398_s22 + $0x18] sm:$0xff]  ;;  %v414_v21 = vld [vmem:[%s398_s22 + $0x28] sm:$0xff]  ;;  %v2422_v32 = vadd.f32 %v418_v25, %v410_v17  ;;  %v2424_v33 = vadd.f32 %v419_v26, %v411_v18  ;;  %s393_s28 = scalar_lea.vmem [#allocation7], %s1806_s25  ;;  %s3017_s24 = scalar_lea.hbm %s3072_s10, %s1832_s11 }
  0x59   : > { %557 = vadd.xlane.f32.xlu0 %v556_v1  ;;  %1839 = vmatpush3.bf16.msra.mxu1 %v1954_v15  ;;  %v413_v20 = vld [vmem:[%s398_s22 + $0x20] sm:$0xff]  ;;  %v415_v22 = vld [vmem:[%s398_s22 + $0x30] sm:$0xff]  ;;  %v416_v23 = vld [vmem:[%s398_s22 + $0x38] sm:$0xff]  ;;  %v2420_v28 = vadd.f32 %v417_v24, %v409_v16  ;;  %v2426_v34 = vadd.f32 %v420_v27, %v412_v19  ;;  %v2430_v37 = vadd.f32 %v422_v30, %v414_v21  ;;  %s1702_s30 = sshll.u32 %s393_s28, 4  ;;  %s3021_s17 = scalar_lea.sflag [#allocation4], %s391_s19  ;;  %s3010_s30 = int_to_ptr.vmem [resolvable:$true] %s1702_s30 }
  0x5a   : > { %v2428_v36 = vadd.f32 %v421_v29, %v413_v20  ;;  %v2432_v38 = vadd.f32 %v423_v31, %v415_v22  ;;  %v2434_v39 = vadd.f32 %v424_v35, %v416_v23  ;;  %s2099_s18 = scalar_lea.vmem %s3010_s30, 1024  ;;  %s2187_s20 = smov [#allocation7]  }
  0x5b   : > { %1922 = vset.pattern.permute.xlu1 %v2176_v4  ;;  %v433_v40 = vadd.f32 %v2424_v33, %v2420_v28  ;;  %v442_v41 = vadd.f32 %v2426_v34, %v2422_v32  ;;  %p2100_p12 = scmp.ne.s32.totalorder %s3010_s30, %s2099_s18  ;;  %s2103_s21 = sshll.u32 %s2187_s20, 4  ;;  %s2104_s21 = int_to_ptr.vmem [resolvable:$false] %s2103_s21 }
  0x5c   : > { %535 = vperm.xlu1 %1922, %v2385_v5   ;;  %s2105_s26 = scalar_lea.vmem %s2104_s21, 2048  ;;  %p2106_p4 = scmp.lt.s32.totalorder %s3010_s30, %s2104_s21 }
  0x5d   : > { %v434_v42 = vadd.f32 %v433_v40, %v2428_v36  ;;  %v443_v43 = vadd.f32 %v442_v41, %v2430_v37  ;;  %p2101_p2 = pnand %p2100_p12, %p3093_p1  ;;  %p2107_p7 = scmp.lt.s32.totalorder %s2105_s26, %s2099_s18 }
  0x5f   : > { %v435_v44 = vadd.f32 %v434_v42, %v2432_v38  ;;  %v444_v45 = vadd.f32 %v443_v43, %v2434_v39  ;;  %p2102_p3 = pneg %p2101_p2  ;;  %p2108_p8 = por %p2107_p7, %p2106_p4 }
  0x60   : > { %1923 = vset.pattern.permute.xlu1 %v2175_v3 }
  0x61   : > { %514 = vperm.xlu1 %1923, %v2392_v6   ;;  %v436_v46 = vrot.slane %v435_v44, 4  ;;  %v445_v47 = vrot.slane %v444_v45, 4  ;;  %p2109_p11 = pnand %p2108_p8, %p2102_p3 }
  0x63   : > { %v437_v48 = vadd.f32 %v436_v46, %v435_v44  ;;  %v446_v49 = vadd.f32 %v445_v47, %v444_v45 }
  0x65   : > { %519 = vperm.xlu1 %1923, %v2399_v7   ;;  %v438_v50 = vrot.slane %v437_v48, 2  ;;  %v447_v51 = vrot.slane %v446_v49, 2 }
  0x67   : > { %v439_v52 = vadd.f32 %v438_v50, %v437_v48  ;;  %v448_v53 = vadd.f32 %v447_v51, %v446_v49 }
  0x69   : > { %1924 = vset.pattern.permute.xlu1 %v2176_v4  ;;  %v440_v54 = vrot.slane %v439_v52, 1  ;;  %v449_v55 = vrot.slane %v448_v53, 1 }
  0x6a   : > { %539 = vperm.xlu1 %1924, %v2392_v6  }
  0x6b   : > { %v441_v56 = vadd.f32 %v440_v54, %v439_v52  ;;  %v450_v57 = vadd.f32 %v449_v55, %v448_v53 }
  0x6d   : > { %v452_v58 = vmul.f32 0.03125, %v441_v56  ;;  %v453_v59 = vmul.f32 0.03125, %v450_v57 }
  0x6e   : > { %543 = vperm.xlu1 %1924, %v2399_v7  }
  0x6f   : > { %v454_v60 = vsub.f32 %v2420_v28, %v452_v58  ;;  %v456_v61 = vsub.f32 %v2424_v33, %v452_v58  ;;  %v455_v62 = vsub.f32 %v2422_v32, %v453_v59  ;;  %v457_v63 = vsub.f32 %v2426_v34, %v453_v59 }
  0x70   : > { %v461_v15 = vsub.f32 %v2434_v39, %v453_v59 }
  0x71   : > { %v462_v1 = vmul.f32 %v454_v60, %v454_v60  ;;  %v464_v4 = vmul.f32 %v456_v61, %v456_v61 }
  0x72   : > { %v469_v20 = vmul.f32 %v461_v15, %v461_v15 }
  0x73   : > { %v470_v14 = vadd.f32 %v464_v4, %v462_v1 }
  0xd2   : > { %v505_v40 = vpop.permute.xlu1 %504 }
  0xd6   : > { %v510_v45 = vpop.permute.xlu1 %509 }
  0xdb   : > { %v536_v48 = vpop.permute.xlu1 %535 }
  0xe0   : > { %v515_v51 = vpop.permute.xlu1 %514 }
  0xe4   : > { %v520_v52 = vpop.permute.xlu1 %519 }
  0xe6   : > { %v558_v8 = vpop.xlane.xlu0 %557 }
  0xe7   : > { %v559_v9 = vmul.f32 0.03125, %v558_v8  ;;  %v459_v8 = vsub.f32 %v2430_v37, %v453_v59 }
  0xe9   : > { %v2404_v10 = vsub.f32 %v554_v0, %v559_v9  ;;  %v458_v0 = vsub.f32 %v2428_v36, %v452_v58  ;;  %v463_v9 = vmul.f32 %v455_v62, %v455_v62  ;;  %v467_v16 = vmul.f32 %v459_v8, %v459_v8  ;;  %v540_v56 = vpop.permute.xlu1 %539 }
  0xeb   : > { %v561_v11 = vmul.f32 %v2404_v10, %v2404_v10  ;;  %v466_v13 = vmul.f32 %v458_v0, %v458_v0 }
  0xed   : > { %v562_v12 = vsel %vm555_vm0, %v561_v11, 0.0  ;;  %v465_v11 = vmul.f32 %v457_v63, %v457_v63  ;;  %v471_v19 = vadd.f32 %v470_v14, %v466_v13  ;;  %v569_v13 = vlaneseq }
  0xee   : > { %563 = vadd.xlane.f32.xlu0 %v562_v12  ;;  %v460_v12 = vsub.f32 %v2432_v38, %v452_v58 }
  0xef   : > { %v479_v17 = vadd.f32 %v465_v11, %v463_v9 }
  0xf0   : > { %v468_v18 = vmul.f32 %v460_v12, %v460_v12 }
  0xf1   : > { %v480_v21 = vadd.f32 %v479_v17, %v467_v16 }
  0xf2   : > { %v472_v22 = vadd.f32 %v471_v19, %v468_v18 }
  0xf3   : > { %v481_v23 = vadd.f32 %v480_v21, %v469_v20 }
  0xf4   : > { %v473_v24 = vrot.slane %v472_v22, 4 }
  0xf5   : > { %v482_v25 = vrot.slane %v481_v23, 4 }
  0xf6   : > { %v474_v26 = vadd.f32 %v473_v24, %v472_v22  ;;  %v544_v22 = vpop.permute.xlu1 %543  ;;  %v2452_v24 = vshrl.u32 %v569_v13, 7 }
  0xf7   : > { %v483_v27 = vadd.f32 %v482_v25, %v481_v23 }
  0xf8   : > { %v475_v29 = vrot.slane %v474_v26, 2  ;;  %v2478_v13 = vsub.s32 2, %v2452_v24 }
  0xf9   : > { %v484_v30 = vrot.slane %v483_v27, 2 }
  0xfa   : > { %v476_v31 = vadd.f32 %v475_v29, %v474_v26 }
  0xfb   : > { %v485_v35 = vadd.f32 %v484_v30, %v483_v27 }
  0xfc   : > { %v477_v41 = vrot.slane %v476_v31, 1 }
  0xfd   : > { %v486_v42 = vrot.slane %v485_v35, 1 }
  0xfe   : > { %v478_v43 = vadd.f32 %v477_v41, %v476_v31  ;;  %v408_v31 = vld [vmem:[#allocation5] sm:$0x3] }
  0xff   : > { %v487_v44 = vadd.f32 %v486_v42, %v485_v35  ;;  %v2458_v42 = vsub.s32 1, %v2452_v24 }
 0x100   : > { %v488_v46 = vmul.f32 0.03125, %v478_v43 }
 0x101   : > { %v489_v47 = vmul.f32 0.03125, %v487_v44 }
 0x102   : > { %v490_v49 = vadd.f32 1e-05, %v488_v46 }
 0x103   : > { %v491_v50 = vadd.f32 1e-05, %v489_v47  ;;  %v577_v47 = vrot.slane %v408_v31, %v2458_v42 }
 0x104   : > { %531 = vperm.xlu0 %1921, %v2377_v2   ;;  %1961 = vrsqrt.f32 %v490_v49  ;;  %v579_v49 = vld [vmem:[%s3067_s5] sm:$0x3] }
 0x105   : > { %1963 = vrsqrt.f32 %v491_v50 }
 0x10e   : > { %v1962_v53 = vpop.eup %1961 }
 0x10f   : > { %v1964_v54 = vpop.eup %1963  ;;  %v496_v55 = vmul.f32 %v1962_v53, %v456_v61  ;;  %v494_v9 = vmul.f32 %v1962_v53, %v454_v60  ;;  %v498_v16 = vmul.f32 %v1962_v53, %v458_v0  ;;  %v500_v17 = vmul.f32 %v1962_v53, %v460_v12 }
 0x110   : > { %v497_v57 = vmul.f32 %v1964_v54, %v457_v63  ;;  %v499_v58 = vmul.f32 %v1964_v54, %v459_v8  ;;  %v501_v59 = vmul.f32 %v1964_v54, %v461_v15  ;;  %v495_v11 = vmul.f32 %v1964_v54, %v455_v62 }
 0x111   : > { %v524_v14 = vmul.f32 %v510_v45, %v496_v55  ;;  %v522_v23 = vmul.f32 %v505_v40, %v494_v9  ;;  %v526_v63 = vmul.f32 %v515_v51, %v498_v16  ;;  %v528_v8 = vmul.f32 %v520_v52, %v500_v17 }
 0x112   : > { %v525_v19 = vmul.f32 %v510_v45, %v497_v57  ;;  %v527_v20 = vmul.f32 %v515_v51, %v499_v58  ;;  %v529_v21 = vmul.f32 %v520_v52, %v501_v59  ;;  %v523_v61 = vmul.f32 %v505_v40, %v495_v11 }
 0x113   : > { %v548_v15 = vadd.f32 %v536_v48, %v524_v14  ;;  %v2455_v12 = vsub.s32 0, %v2452_v24  ;;  %v550_v29 = vadd.f32 %v540_v56, %v526_v63  ;;  %v552_v30 = vadd.f32 %v544_v22, %v528_v8 }
 0x114   : > { %v549_v25 = vadd.f32 %v536_v48, %v525_v19  ;;  %v551_v60 = vadd.f32 %v540_v56, %v527_v20  ;;  %v553_v62 = vadd.f32 %v544_v22, %v529_v21  ;;  %v2179_v52 = vmov 4  }
 0x115   : > { %v572_v43 = vrot.slane %v408_v31, %v2455_v12  ;;  %v582_v44 = vpack.c.bf16 %v552_v30, %v550_v29  ;;  %1925 = vset.pattern.permute.xlu0 %v2179_v52  ;;  %1926 = vset.pattern.permute.xlu1 %v2179_v52  ;;  %v2483_v16 = vsub.s32 3, %v2452_v24  ;;  %v2180_v17 = vmov 7  }
 0x116   : > { %v583_v35 = vpack.c.bf16 %v553_v62, %v551_v60  ;;  %v718_v19 = vsub.s32 4, %v2452_v24  ;;  %v2181_v20 = vmov 6   ;;  %v725_v22 = vsub.s32 5, %v2452_v24 }
 0x117   : > { %v2182_v8 = vmov 8  }
 0x17b   : > { %v564_v1 = vpop.xlane.xlu0 %563 }
 0x17c   : > { %v565_v4 = vmul.f32 0.03125, %v564_v1 }
 0x17e   : > { %v566_v18 = vadd.f32 1e-05, %v565_v4 }
 0x180   : > { %1965 = vrsqrt.f32 %v566_v18 }
 0x183   : > { %v532_v26 = vpop.permute.xlu0 %531 }
 0x184   : > { %v546_v27 = vadd.f32 %v532_v26, %v522_v23  ;;  %v547_v0 = vadd.f32 %v532_v26, %v523_v61  ;;  %v739_v61 = vsub.s32 7, %v2452_v24 }
 0x186   : > { %v581_v41 = vpack.c.bf16 %v549_v25, %v547_v0  ;;  %v580_v40 = vpack.c.bf16 %v548_v15, %v546_v27  ;;  %v2184_v15 = vmov 2   ;;  %v2185_v25 = vmov 3  }
 0x188   : > { %587 = vmatprep.subr.bf16.mxu0 %v581_v41 }
 0x189   : > { %588 = vmatpush1.bf16.msra.mxu0 %v580_v40 }
 0x18a   : > { %v1966_v45 = vpop.eup %1965  ;;  %589 = vmatprep.subr.bf16.mxu0 %v583_v35 }
 0x18b   : > { %v568_v46 = vmul.f32 %v1966_v45, %v2404_v10  ;;  %v732_v10 = vsub.s32 6, %v2452_v24  ;;  %v2183_v24 = vmov 9  }
 0x18d   : > { %v573_v48 = vmul.f32 %v572_v43, %v568_v46  ;;  %590 = vmatpush1.bf16.msra.mxu0 %v582_v44 }
 0x18f   : > { %v578_v50 = vadd.f32 %v577_v47, %v573_v48 }
 0x190   : > { %1810 = vmatmul.mubr.msk.bf16.vlgmr.msra.gmra.mrb[0].mxu0 %vm555_vm0, %v579_v49 }
 0x191   : > { %v628_v51 = vpack.c.bf16 %v578_v50, %v578_v50  ;;  %1389 = vmatprep.mubr.bf16.mxu0 %v2175_v3 }
 0x193   : > { %1841 = vmatmul.mubr.msk.bf16.vlgmr.msra.gmra.mrb[0].mxu1 %vm555_vm0, %v628_v51 }
 0x194   : > { %1651 = vmatprep.mubr.bf16.mxu1 %v2175_v3 }
 0x263   : > { %v2471_v53 = vpop.f32.mrb[0].mxu0 }
 0x264   : > { %v2473_v54 = vpop.f32.mrb[1].mxu0 }
 0x265   : > { %v625_v55 = vpop.f32.mrb[2].mxu0 }
 0x266   : > { %v682_v56 = vpop.f32.mrb[0].mxu1  ;;  %v626_v57 = vpop.f32.mrb[3].mxu0 }
 0x267   : > { %v1842_v58 = vpop.f32.mrb[1].mxu1  ;;  %v733_v59 = vrot.slane %v682_v56, %v732_v10  ;;  %v691_v1 = vrot.slane %v682_v56, %v2455_v12  ;;  %v698_v11 = vrot.slane %v682_v56, %v2458_v42  ;;  %v705_v14 = vrot.slane %v682_v56, %v2478_v13 }
 0x268   : > { %v685_v4 = vpop.f32.mrb[2].mxu1  ;;  %v712_v18 = vrot.slane %v682_v56, %v2483_v16  ;;  %v719_v21 = vrot.slane %v682_v56, %v718_v19  ;;  %v726_v23 = vrot.slane %v682_v56, %v725_v22  ;;  %v740_v63 = vrot.slane %v682_v56, %v739_v61 }
 0x269   : > { %v1843_v9 = vpop.f32.mrb[3].mxu1  ;;  %735 = vbcast.lane.b32.xlu0 %v733_v59, 256  ;;  %693 = vbcast.lane.b32.xlu1 %v691_v1, 256 }
 0x26d   : > { %966 = vperm.xlu0 %1925, %v2377_v2   ;;  %700 = vbcast.lane.b32.xlu1 %v698_v11, 256 }
 0x271   : > { %1930 = vset.pattern.permute.xlu0 %v2180_v17  ;;  %707 = vbcast.lane.b32.xlu1 %v705_v14, 256 }
 0x272   : > { %1030 = vperm.xlu0 %1930, %v2377_v2  }
 0x275   : > { %714 = vbcast.lane.b32.xlu1 %v712_v18, 256 }
 0x276   : > { %1931 = vset.pattern.permute.xlu0 %v2181_v20 }
 0x277   : > { %994 = vperm.xlu0 %1931, %v2385_v5  }
 0x279   : > { %721 = vbcast.lane.b32.xlu1 %v719_v21, 256 }
 0x27b   : > { %1002 = vperm.xlu0 %1931, %v2399_v7  }
 0x27d   : > { %728 = vbcast.lane.b32.xlu1 %v726_v23, 256 }
 0x27f   : > { %889 = vbcast.lane.b32.xlu0 %v691_v1, 260 }
 0x280   : > { %1936 = vset.pattern.permute.xlu0 %v2182_v8 }
 0x281   : > { %742 = vbcast.lane.b32.xlu1 %v740_v63, 256 }
 0x283   : > { %897 = vbcast.lane.b32.xlu0 %v705_v14, 260 }
 0x285   : > { %970 = vperm.xlu1 %1926, %v2385_v5  }
 0x287   : > { %905 = vbcast.lane.b32.xlu0 %v719_v21, 260 }
 0x289   : > { %1927 = vset.pattern.permute.xlu1 %v2181_v20 }
 0x28a   : > { %990 = vperm.xlu1 %1927, %v2377_v2  }
 0x28b   : > { %913 = vbcast.lane.b32.xlu0 %v733_v59, 260 }
 0x28e   : > { %1928 = vset.pattern.permute.xlu1 %v2179_v52 }
 0x28f   : > { %974 = vperm.xlu1 %1928, %v2392_v6   ;;  %1074 = vperm.xlu0 %1936, %v2385_v5  }
 0x293   : > { %1929 = vset.pattern.permute.xlu1 %v2181_v20  ;;  %1939 = vset.pattern.permute.xlu0 %v2183_v24 }
 0x294   : > { %998 = vperm.xlu1 %1929, %v2392_v6   ;;  %1110 = vperm.xlu0 %1939, %v2377_v2  }
 0x298   : > { %1932 = vset.pattern.permute.xlu1 %v2180_v17  ;;  %1118 = vperm.xlu0 %1939, %v2392_v6  }
 0x299   : > { %1034 = vperm.xlu1 %1932, %v2385_v5  }
 0x29c   : > { %1943 = vset.pattern.permute.xlu0 %v2184_v15 }
 0x29d   : > { %1933 = vset.pattern.permute.xlu1 %v2179_v52  ;;  %1218 = vperm.xlu0 %1943, %v2377_v2  }
 0x29e   : > { %978 = vperm.xlu1 %1933, %v2399_v7  }
 0x2a1   : > { %1946 = vset.pattern.permute.xlu0 %v2185_v25 }
 0x2a2   : > { %1934 = vset.pattern.permute.xlu1 %v2180_v17  ;;  %1246 = vperm.xlu0 %1946, %v2385_v5  }
 0x2a3   : > { %1038 = vperm.xlu1 %1934, %v2392_v6  }
 0x2a6   : > { %1250 = vperm.xlu0 %1946, %v2392_v6  }
 0x2a7   : > { %1935 = vset.pattern.permute.xlu1 %v2182_v8 }
 0x2a8   : > { %1070 = vperm.xlu1 %1935, %v2377_v2  }
 0x2aa   : > { %1949 = vset.pattern.permute.xlu0 %v2175_v3 }
 0x2ac   : > { %893 = vbcast.lane.b32.xlu1 %v698_v11, 260 }
 0x2ad   : > { %1937 = vset.pattern.permute.xlu1 %v2180_v17 }
 0x2b0   : > { %901 = vbcast.lane.b32.xlu1 %v712_v18, 260 }
 0x2b4   : > { %909 = vbcast.lane.b32.xlu1 %v726_v23, 260 }
 0x2b8   : > { %1042 = vperm.xlu1 %1937, %v2399_v7  }
 0x2bc   : > { %1938 = vset.pattern.permute.xlu1 %v2182_v8 }
 0x2bd   : > { %1078 = vperm.xlu1 %1938, %v2392_v6  }
 0x2c1   : > { %917 = vbcast.lane.b32.xlu1 %v740_v63, 260 }
 0x2c2   : > { %1940 = vset.pattern.permute.xlu1 %v2183_v24 }
 0x2c5   : > { %1114 = vperm.xlu1 %1940, %v2385_v5  }
 0x2c9   : > { %1941 = vset.pattern.permute.xlu1 %v2182_v8 }
 0x2ca   : > { %1082 = vperm.xlu1 %1941, %v2399_v7  }
 0x2ce   : > { %1942 = vset.pattern.permute.xlu1 %v2183_v24 }
 0x2cf   : > { %1122 = vperm.xlu1 %1942, %v2399_v7  }
 0x2d3   : > { %1944 = vset.pattern.permute.xlu1 %v2184_v15 }
 0x2d4   : > { %1222 = vperm.xlu1 %1944, %v2385_v5  }
 0x2d8   : > { %1945 = vset.pattern.permute.xlu1 %v2185_v25 }
 0x2d9   : > { %1242 = vperm.xlu1 %1945, %v2377_v2  }
 0x2db   : > { %v694_v60 = vpop.permute.xlu1 %693  ;;  %v736_v41 = vpop.permute.xlu0 %735 }
 0x2dc   : > { %v2524_v2 = vmul.f32 %v694_v60, %v2471_v53  ;;  %v2527_v29 = vmul.f32 %v694_v60, %v2473_v54  ;;  %v2567_v56 = vmul.f32 %v736_v41, %v2471_v53  ;;  %v2570_v59 = vmul.f32 %v736_v41, %v2473_v54 }
 0x2dd   : > { %1947 = vset.pattern.permute.xlu1 %v2184_v15 }
 0x2de   : > { %1226 = vperm.xlu1 %1947, %v2392_v6   ;;  %v761_v46 = vsel %vm760_vm2, %v2524_v2, -inf  ;;  %v776_v47 = vsel %vm760_vm2, %v2527_v29, -inf  ;;  %v771_v63 = vsel %vm760_vm2, %v2567_v56, -inf  ;;  %v786_v8 = vsel %vm760_vm2, %v2570_v59, -inf }
 0x2df   : > { %v701_v62 = vpop.permute.xlu1 %700 }
 0x2e0   : > { %v746_v40 = vmul.f32 %v701_v62, %v2471_v53  ;;  %v747_v43 = vmul.f32 %v701_v62, %v2473_v54 }
 0x2e2   : > { %1230 = vperm.xlu1 %1947, %v2399_v7   ;;  %v762_v1 = vsel %vm760_vm2, %v746_v40, -inf  ;;  %v777_v4 = vsel %vm760_vm2, %v747_v43, -inf }
 0x2e3   : > { %v708_v26 = vpop.permute.xlu1 %707 }
 0x2e4   : > { %v2518_v0 = vmul.f32 %v708_v26, %v2471_v53  ;;  %v2521_v5 = vmul.f32 %v708_v26, %v2473_v54 }
 0x2e6   : > { %1948 = vset.pattern.permute.xlu1 %v2185_v25  ;;  %v763_v44 = vsel %vm760_vm2, %v2518_v0, -inf  ;;  %v778_v45 = vsel %vm760_vm2, %v2521_v5, -inf }
 0x2e7   : > { %v715_v27 = vpop.permute.xlu1 %714  ;;  %1254 = vperm.xlu1 %1948, %v2399_v7   ;;  %v764_v57 = vmax.f32 %v761_v46, %v763_v44  ;;  %v779_v58 = vmax.f32 %v776_v47, %v778_v45 }
 0x2e8   : > { %v2530_v6 = vmul.f32 %v715_v27, %v2471_v53  ;;  %v2533_v30 = vmul.f32 %v715_v27, %v2473_v54 }
 0x2ea   : > { %v765_v48 = vsel %vm760_vm2, %v2530_v6, -inf  ;;  %v780_v49 = vsel %vm760_vm2, %v2533_v30, -inf }
 0x2eb   : > { %v722_v31 = vpop.permute.xlu1 %721  ;;  %1950 = vset.pattern.permute.xlu1 %v2175_v3  ;;  %v766_v14 = vmax.f32 %v762_v1, %v765_v48  ;;  %v781_v17 = vmax.f32 %v777_v4, %v780_v49 }
 0x2ec   : > { %v2537_v7 = vmul.f32 %v722_v31, %v2471_v53  ;;  %v2540_v35 = vmul.f32 %v722_v31, %v2473_v54 }
 0x2ee   : > { %v767_v51 = vsel %vm760_vm2, %v2537_v7, -inf  ;;  %v782_v52 = vsel %vm760_vm2, %v2540_v35, -inf }
 0x2ef   : > { %v729_v50 = vpop.permute.xlu1 %728  ;;  %v768_v18 = vmax.f32 %v764_v57, %v767_v51  ;;  %v783_v19 = vmax.f32 %v779_v58, %v782_v52 }
 0x2f0   : > { %v2561_v10 = vmul.f32 %v729_v50, %v2471_v53  ;;  %v2564_v55 = vmul.f32 %v729_v50, %v2473_v54 }
 0x2f1   : > { %v772_v25 = vmax.f32 %v768_v18, %v771_v63  ;;  %v787_v60 = vmax.f32 %v783_v19, %v786_v8  ;;  %v2615_v8 = vpop.permute.xlu0 %966 }
 0x2f2   : > { %v769_v9 = vsel %vm760_vm2, %v2561_v10, -inf  ;;  %v784_v11 = vsel %vm760_vm2, %v2564_v55, -inf }
 0x2f3   : > { %v743_v20 = vpop.permute.xlu1 %742  ;;  %v770_v23 = vmax.f32 %v766_v14, %v769_v9  ;;  %v785_v61 = vmax.f32 %v781_v17, %v784_v11 }
 0x2f4   : > { %v758_v21 = vmul.f32 %v743_v20, %v2471_v53  ;;  %v759_v22 = vmul.f32 %v743_v20, %v2473_v54 }
 0x2f6   : > { %v773_v24 = vsel %vm760_vm2, %v758_v21, -inf  ;;  %v788_v15 = vsel %vm760_vm2, %v759_v22, -inf }
 0x2f7   : > { %v774_v62 = vmax.f32 %v770_v23, %v773_v24  ;;  %v789_v26 = vmax.f32 %v785_v61, %v788_v15 }
 0x2f9   : > { %v775_v27 = vmax.f32 %v772_v25, %v774_v62  ;;  %v790_v53 = vmax.f32 %v787_v60, %v789_v26 }
 0x2fb   : > { %v805_v31 = vsub.f32 %v758_v21, %v775_v27  ;;  %v806_v54 = vsub.f32 %v759_v22, %v790_v53  ;;  %v791_v41 = vsub.f32 %v2524_v2, %v775_v27  ;;  %v792_v44 = vsub.f32 %v2527_v29, %v790_v53 }
 0x2fc   : > { %v793_v45 = vsub.f32 %v746_v40, %v775_v27  ;;  %v794_v46 = vsub.f32 %v747_v43, %v790_v53  ;;  %v795_v49 = vsub.f32 %v2518_v0, %v775_v27  ;;  %v796_v50 = vsub.f32 %v2521_v5, %v790_v53 }
 0x2fd   : > { %v835_v47 = vmul.f32 1.442695, %v805_v31  ;;  %v837_v48 = vmul.f32 1.442695, %v806_v54  ;;  %v797_v51 = vsub.f32 %v2530_v6, %v775_v27  ;;  %v798_v52 = vsub.f32 %v2533_v30, %v790_v53 }
 0x2fe   : > { %v807_v57 = vmul.f32 1.442695, %v791_v41  ;;  %v809_v58 = vmul.f32 1.442695, %v792_v44  ;;  %v811_v1 = vmul.f32 1.442695, %v793_v45  ;;  %v799_v29 = vsub.f32 %v2537_v7, %v775_v27 }
 0x2ff   : > { %1967 = vpow2.f32 %v835_v47  ;;  %v813_v2 = vmul.f32 1.442695, %v794_v46  ;;  %v815_v40 = vmul.f32 1.442695, %v795_v49  ;;  %v800_v43 = vsub.f32 %v2540_v35, %v790_v53 }
 0x300   : > { %1969 = vpow2.f32 %v837_v48  ;;  %v817_v0 = vmul.f32 1.442695, %v796_v50  ;;  %v801_v5 = vsub.f32 %v2561_v10, %v775_v27  ;;  %v819_v4 = vmul.f32 1.442695, %v797_v51 }
 0x301   : > { %1971 = vpow2.f32 %v807_v57  ;;  %v802_v6 = vsub.f32 %v2564_v55, %v790_v53  ;;  %v821_v30 = vmul.f32 1.442695, %v798_v52  ;;  %v803_v11 = vsub.f32 %v2567_v56, %v775_v27  ;;  %v2629_v52 = vpop.permute.xlu0 %1030 }
 0x302   : > { %1973 = vpow2.f32 %v809_v58  ;;  %v823_v7 = vmul.f32 1.442695, %v799_v29  ;;  %v804_v14 = vsub.f32 %v2570_v59, %v790_v53  ;;  %v825_v35 = vmul.f32 1.442695, %v800_v43 }
 0x303   : > { %1975 = vpow2.f32 %v811_v1  ;;  %v827_v17 = vmul.f32 1.442695, %v801_v5  ;;  %v829_v10 = vmul.f32 1.442695, %v802_v6  ;;  %v831_v55 = vmul.f32 1.442695, %v803_v11 }
 0x304   : > { %1977 = vpow2.f32 %v813_v2  ;;  %v2596_v9 = vpop.permute.xlu1 %970  ;;  %v833_v56 = vmul.f32 1.442695, %v804_v14 }
 0x305   : > { %1979 = vpow2.f32 %v815_v40 }
 0x306   : > { %1981 = vpow2.f32 %v817_v0 }
 0x307   : > { %1983 = vpow2.f32 %v819_v4 }
 0x308   : > { %1985 = vpow2.f32 %v821_v30 }
 0x309   : > { %v2600_v18 = vpop.eup %1967  ;;  %1987 = vpow2.f32 %v823_v7  ;;  %v2602_v19 = vpop.permute.xlu1 %990 }
 0x30a   : > { %v2604_v20 = vpop.eup %1969  ;;  %1989 = vpow2.f32 %v825_v35 }
 0x30b   : > { %v2606_v21 = vpop.eup %1971  ;;  %1991 = vpow2.f32 %v827_v17 }
 0x30c   : > { %v1974_v59 = vpop.eup %1973  ;;  %1993 = vpow2.f32 %v829_v10  ;;  %v839_v22 = vsel %vm760_vm2, %v2606_v21, 0.0  ;;  %v852_v10 = vsel %vm760_vm2, %v2600_v18, 0.0 }
 0x30d   : > { %v2610_v23 = vpop.eup %1975  ;;  %1995 = vpow2.f32 %v831_v55  ;;  %v854_v61 = vsel %vm760_vm2, %v1974_v59, 0.0  ;;  %v2653_v55 = vpop.permute.xlu0 %994 }
 0x30e   : > { %v2613_v63 = vpop.eup %1977  ;;  %1997 = vpow2.f32 %v833_v56  ;;  %v840_v24 = vsel %vm760_vm2, %v2610_v23, 0.0  ;;  %v2619_v15 = vpop.permute.xlu1 %974 }
 0x30f   : > { %v1980_v25 = vpop.eup %1979  ;;  %v841_v60 = vadd.f32 %v840_v24, %v839_v22  ;;  %v855_v62 = vsel %vm760_vm2, %v2613_v63, 0.0  ;;  %v867_v22 = vsel %vm760_vm2, %v2604_v20, 0.0 }
 0x310   : > { %v1982_v26 = vpop.eup %1981  ;;  %v842_v27 = vsel %vm760_vm2, %v1980_v25, 0.0  ;;  %v856_v53 = vadd.f32 %v855_v62, %v854_v61 }
 0x311   : > { %v1984_v31 = vpop.eup %1983  ;;  %v843_v54 = vadd.f32 %v842_v27, %v841_v60  ;;  %v857_v41 = vsel %vm760_vm2, %v1982_v26, 0.0  ;;  %v2659_v62 = vpop.permute.xlu0 %1002 }
 0x312   : > { %v1986_v44 = vpop.eup %1985  ;;  %v844_v45 = vsel %vm760_vm2, %v1984_v31, 0.0  ;;  %v858_v46 = vadd.f32 %v857_v41, %v856_v53 }
 0x313   : > { %v1988_v47 = vpop.eup %1987  ;;  %v845_v48 = vadd.f32 %v844_v45, %v843_v54  ;;  %v859_v49 = vsel %vm760_vm2, %v1986_v44, 0.0  ;;  %v2627_v50 = vpop.permute.xlu1 %998 }
 0x314   : > { %v1990_v51 = vpop.eup %1989  ;;  %v846_v57 = vsel %vm760_vm2, %v1988_v47, 0.0  ;;  %v860_v58 = vadd.f32 %v859_v49, %v858_v46 }
 0x315   : > { %v2632_v1 = vpop.eup %1991  ;;  %v847_v2 = vadd.f32 %v846_v57, %v845_v48  ;;  %v861_v29 = vsel %vm760_vm2, %v1990_v51, 0.0  ;;  %v890_v53 = vpop.permute.xlu0 %889 }
 0x316   : > { %v2635_v40 = vpop.eup %1993  ;;  %v848_v43 = vsel %vm760_vm2, %v2632_v1, 0.0  ;;  %v862_v0 = vadd.f32 %v861_v29, %v860_v58 }
 0x317   : > { %v2639_v5 = vpop.eup %1995  ;;  %v849_v4 = vadd.f32 %v848_v43, %v847_v2  ;;  %v863_v6 = vsel %vm760_vm2, %v2635_v40, 0.0 }
 0x318   : > { %v2643_v30 = vpop.eup %1997  ;;  %v850_v11 = vsel %vm760_vm2, %v2639_v5, 0.0  ;;  %v864_v7 = vadd.f32 %v863_v6, %v862_v0  ;;  %v2647_v14 = vpop.permute.xlu1 %1034 }
 0x319   : > { %v851_v35 = vadd.f32 %v850_v11, %v849_v4  ;;  %v865_v17 = vsel %vm760_vm2, %v2643_v30, 0.0  ;;  %v898_v2 = vpop.permute.xlu0 %897 }
 0x31a   : > { %v866_v56 = vadd.f32 %v865_v17, %v864_v7 }
 0x31b   : > { %v853_v61 = vadd.f32 %v852_v10, %v851_v35 }
 0x31c   : > { %v868_v24 = vadd.f32 %v867_v22, %v866_v56 }
 0x31d   : > { %1999 = vrcp.f32 %v853_v61  ;;  %v2657_v60 = vpop.permute.xlu1 %978 }
 0x31e   : > { %2001 = vrcp.f32 %v868_v24 }
 0x322   : > { %v2661_v27 = vpop.permute.xlu1 %1038 }
 0x327   : > { %v2663_v54 = vpop.eup %1999  ;;  %v2665_v41 = vpop.permute.xlu1 %1070 }
 0x328   : > { %v2667_v45 = vpop.eup %2001  ;;  %v870_v46 = vmul.f32 %v2663_v54, %v2606_v21  ;;  %v875_v49 = vmul.f32 %v2663_v54, %v1980_v25  ;;  %v873_v0 = vmul.f32 %v2663_v54, %v2610_v23  ;;  %v877_v6 = vmul.f32 %v2663_v54, %v1984_v31 }
 0x329   : > { %v872_v48 = vmul.f32 %v2667_v45, %v1974_v59  ;;  %v876_v57 = vmul.f32 %v2667_v45, %v1982_v26  ;;  %v874_v4 = vmul.f32 %v2667_v45, %v2613_v63  ;;  %v878_v21 = vmul.f32 %v2667_v45, %v1986_v44  ;;  %v906_v63 = vpop.permute.xlu0 %905 }
 0x32a   : > { %v919_v29 = vmul.f32 %v890_v53, %v870_v46  ;;  %v923_v11 = vmul.f32 %v898_v2, %v875_v49  ;;  %v879_v25 = vmul.f32 %v2663_v54, %v1988_v47  ;;  %v880_v26 = vmul.f32 %v2667_v45, %v1990_v51 }
 0x32b   : > { %v894_v58 = vpop.permute.xlu1 %893  ;;  %v920_v43 = vmul.f32 %v890_v53, %v872_v48  ;;  %v924_v59 = vmul.f32 %v898_v2, %v876_v57 }
 0x32c   : > { %v921_v35 = vmul.f32 %v894_v58, %v873_v0  ;;  %v922_v17 = vmul.f32 %v894_v58, %v874_v4  ;;  %v935_v23 = vsel %vm760_vm2, %v919_v29, 0.0  ;;  %v927_v61 = vmul.f32 %v906_v63, %v879_v25 }
 0x32d   : > { %v950_v22 = vsel %vm760_vm2, %v920_v43, 0.0  ;;  %v928_v24 = vmul.f32 %v906_v63, %v880_v26  ;;  %v938_v51 = vsel %vm760_vm2, %v923_v11, 0.0  ;;  %v953_v48 = vsel %vm760_vm2, %v924_v59, 0.0 }
 0x32e   : > { %v936_v31 = vsel %vm760_vm2, %v921_v35, 0.0  ;;  %v951_v44 = vsel %vm760_vm2, %v922_v17, 0.0  ;;  %v881_v29 = vmul.f32 %v2663_v54, %v2632_v1  ;;  %v882_v43 = vmul.f32 %v2667_v45, %v2635_v40 }
 0x32f   : > { %v902_v7 = vpop.permute.xlu1 %901  ;;  %v937_v53 = vadd.f32 %v936_v31, %v935_v23  ;;  %v952_v47 = vadd.f32 %v951_v44, %v950_v22  ;;  %v942_v11 = vsel %vm760_vm2, %v927_v61, 0.0  ;;  %v957_v59 = vsel %vm760_vm2, %v928_v24, 0.0  ;;  %v1277_v23 = vld [vmem:[%s3070_s8] sm:$0xff]  ;;  %v1280_v44 = vld [vmem:[%s3070_s8 + $0x18] sm:$0xff]  ;;  %v1279_v61 = vld [vmem:[%s3070_s8 + $0x10] sm:$0xff] }
 0x330   : > { %v925_v10 = vmul.f32 %v902_v7, %v877_v6  ;;  %v926_v56 = vmul.f32 %v902_v7, %v878_v21  ;;  %v883_v26 = vmul.f32 %v2663_v54, %v2639_v5  ;;  %v884_v7 = vmul.f32 %v2667_v45, %v2643_v30  ;;  %v1278_v5 = vld [vmem:[%s3070_s8 + $0x8] sm:$0xff]  ;;  %1287 = vperm.xlu0 %1949, %v1277_v23  }
 0x331   : > { %v939_v58 = vadd.f32 %v938_v51, %v937_v53  ;;  %v954_v2 = vadd.f32 %v953_v48, %v952_v47  ;;  %1292 = vperm.xlu1 %1950, %v1278_v5   ;;  %v885_v24 = vmul.f32 %v2663_v54, %v2600_v18  ;;  %v886_v53 = vmul.f32 %v2667_v45, %v2604_v20  ;;  %v1281_v18 = vld [vmem:[%s3070_s8 + $0x20] sm:$0xff] }
 0x332   : > { %v940_v49 = vsel %vm760_vm2, %v925_v10, 0.0  ;;  %v955_v57 = vsel %vm760_vm2, %v926_v56, 0.0  ;;  %v914_v10 = vpop.permute.xlu0 %913  ;;  %v981_v20 = vadd.f32 %v2615_v8, %v2420_v28  ;;  %v986_v28 = vadd.f32 %v2619_v15, %v2430_v37 }
 0x333   : > { %v910_v46 = vpop.permute.xlu1 %909  ;;  %v941_v0 = vadd.f32 %v940_v49, %v939_v58  ;;  %v956_v4 = vadd.f32 %v955_v57, %v954_v2  ;;  %v931_v22 = vmul.f32 %v914_v10, %v883_v26  ;;  %v932_v63 = vmul.f32 %v914_v10, %v884_v7 }
 0x334   : > { %v929_v6 = vmul.f32 %v910_v46, %v881_v29  ;;  %v930_v21 = vmul.f32 %v910_v46, %v882_v43  ;;  %1302 = vperm.xlu0 %1949, %v1280_v44   ;;  %v1282_v29 = vld [vmem:[%s3070_s8 + $0x28] sm:$0xff]  ;;  %v982_v43 = vadd.f32 %v2615_v8, %v2422_v32 }
 0x335   : > { %v943_v1 = vadd.f32 %v942_v11, %v941_v0  ;;  %v958_v35 = vadd.f32 %v957_v59, %v956_v4  ;;  %v946_v46 = vsel %vm760_vm2, %v931_v22, 0.0  ;;  %v961_v51 = vsel %vm760_vm2, %v932_v63, 0.0  ;;  %1297 = vperm.xlu1 %1950, %v1279_v61  }
 0x336   : > { %v944_v40 = vsel %vm760_vm2, %v929_v6, 0.0  ;;  %v959_v17 = vsel %vm760_vm2, %v930_v21, 0.0  ;;  %v1075_v2 = vpop.permute.xlu0 %1074  ;;  %v983_v0 = vadd.f32 %v2596_v9, %v2424_v33  ;;  %v984_v21 = vadd.f32 %v2596_v9, %v2426_v34  ;;  %v1284_v34 = vld [vmem:[%s3070_s8 + $0x38] sm:$0xff] }
 0x337   : > { %v2694_v25 = vpop.permute.xlu1 %1042  ;;  %v945_v30 = vadd.f32 %v944_v40, %v943_v1  ;;  %v960_v31 = vadd.f32 %v959_v17, %v958_v35  ;;  %v985_v11 = vadd.f32 %v2619_v15, %v2428_v36 }
 0x338   : > { %1312 = vperm.xlu0 %1949, %v1282_v29  }
 0x339   : > { %v947_v57 = vadd.f32 %v946_v46, %v945_v30  ;;  %v962_v58 = vadd.f32 %v961_v51, %v960_v31  ;;  %1307 = vperm.xlu1 %1950, %v1281_v18  }
 0x33a   : > { %v1111_v15 = vpop.permute.xlu0 %1110 }
 0x33c   : > { %v2704_v56 = vpop.permute.xlu1 %1078  ;;  %1322 = vperm.xlu0 %1949, %v1284_v34  }
 0x340   : > { %v918_v47 = vpop.permute.xlu1 %917 }
 0x341   : > { %v933_v48 = vmul.f32 %v918_v47, %v885_v24  ;;  %v934_v49 = vmul.f32 %v918_v47, %v886_v53 }
 0x343   : > { %v948_v54 = vsel %vm760_vm2, %v933_v48, 0.0  ;;  %v963_v45 = vsel %vm760_vm2, %v934_v49, 0.0 }
 0x344   : > { %v949_v4 = vadd.f32 %v948_v54, %v947_v57  ;;  %v964_v6 = vadd.f32 %v963_v45, %v962_v58  ;;  %v1115_v35 = vpop.permute.xlu1 %1114 }
 0x346   : > { %v1008_v59 = vrot.slane %v949_v4, %v2455_v12  ;;  %v1012_v32 = vrot.slane %v964_v6, %v2455_v12  ;;  %v2747_v8 = vrot.slane %v949_v4, %v2458_v42  ;;  %v2750_v33 = vrot.slane %v964_v6, %v2458_v42  ;;  %v1283_v42 = vld [vmem:[%s3070_s8 + $0x30] sm:$0xff] }
 0x347   : > { %v2756_v36 = vrot.slane %v949_v4, %v2478_v13  ;;  %v2759_v37 = vrot.slane %v964_v6, %v2478_v13  ;;  %v2762_v9 = vrot.slane %v949_v4, %v2483_v16  ;;  %v2765_v12 = vrot.slane %v964_v6, %v2483_v16  ;;  %1317 = vperm.xlu1 %1950, %v1283_v42  }
 0x348   : > { %v1013_v26 = vmul.f32 %v1008_v59, %v2602_v19  ;;  %v1014_v7 = vmul.f32 %v1012_v32, %v2602_v19  ;;  %v1053_v1 = vmul.f32 %v2747_v8, %v2629_v52  ;;  %v1054_v13 = vmul.f32 %v2750_v33, %v2629_v52 }
 0x349   : > { %v1093_v16 = vmul.f32 %v2756_v36, %v2665_v41  ;;  %v1094_v40 = vmul.f32 %v2759_v37, %v2665_v41  ;;  %v1133_v17 = vmul.f32 %v2762_v9, %v1111_v15  ;;  %v1134_v10 = vmul.f32 %v2765_v12, %v1111_v15  ;;  %v1083_v57 = vpop.permute.xlu1 %1082 }
 0x34a   : > { %v1021_v23 = vadd.f32 %v1013_v26, %v981_v20  ;;  %v1022_v19 = vadd.f32 %v1014_v7, %v982_v43  ;;  %v1015_v5 = vmul.f32 %v1008_v59, %v2653_v55  ;;  %v1016_v22 = vmul.f32 %v1012_v32, %v2653_v55 }
 0x34b   : > { %v1055_v52 = vmul.f32 %v2747_v8, %v2647_v14  ;;  %v1056_v63 = vmul.f32 %v2750_v33, %v2647_v14  ;;  %v1095_v41 = vmul.f32 %v2756_v36, %v1075_v2  ;;  %v1096_v30 = vmul.f32 %v2759_v37, %v1075_v2 }
 0x34c   : > { %v1061_v31 = vadd.f32 %v1053_v1, %v1021_v23  ;;  %v1062_v44 = vadd.f32 %v1054_v13, %v1022_v19  ;;  %v1023_v61 = vadd.f32 %v1015_v5, %v983_v0  ;;  %v1024_v24 = vadd.f32 %v1016_v22, %v984_v21 }
 0x34d   : > { %v1135_v53 = vmul.f32 %v2762_v9, %v1115_v35  ;;  %v1136_v47 = vmul.f32 %v2765_v12, %v1115_v35  ;;  %v1017_v55 = vmul.f32 %v1008_v59, %v2627_v50  ;;  %v1018_v46 = vmul.f32 %v1012_v32, %v2627_v50  ;;  %v1119_v50 = vpop.permute.xlu0 %1118 }
 0x34e   : > { %v1101_v51 = vadd.f32 %v1093_v16, %v1061_v31  ;;  %v1102_v48 = vadd.f32 %v1094_v40, %v1062_v44  ;;  %v1063_v49 = vadd.f32 %v1055_v52, %v1023_v61  ;;  %v1064_v14 = vadd.f32 %v1056_v63, %v1024_v24 }
 0x34f   : > { %v1025_v58 = vadd.f32 %v1017_v55, %v985_v11  ;;  %v1026_v29 = vadd.f32 %v1018_v46, %v986_v28  ;;  %v1057_v2 = vmul.f32 %v2747_v8, %v2661_v27  ;;  %v1058_v18 = vmul.f32 %v2750_v33, %v2661_v27 }
 0x350   : > { %v2798_v20 = vadd.f32 %v1133_v17, %v1101_v51  ;;  %v2800_v54 = vadd.f32 %v1134_v10, %v1102_v48  ;;  %v1103_v45 = vadd.f32 %v1095_v41, %v1063_v49  ;;  %v1104_v43 = vadd.f32 %v1096_v30, %v1064_v14 }
 0x351   : > { %v1065_v0 = vadd.f32 %v1057_v2, %v1025_v58  ;;  %v1066_v4 = vadd.f32 %v1058_v18, %v1026_v29  ;;  %v1097_v6 = vmul.f32 %v2756_v36, %v2704_v56  ;;  %v1098_v21 = vmul.f32 %v2759_v37, %v2704_v56 }
 0x352   : > { %v987_v11 = vadd.f32 %v2657_v60, %v2432_v38  ;;  %v988_v27 = vadd.f32 %v2657_v60, %v2434_v39  ;;  %v2810_v28 = vadd.f32 %v1135_v53, %v1103_v45  ;;  %v2812_v34 = vadd.f32 %v1136_v47, %v1104_v43  ;;  %v1123_v60 = vpop.permute.xlu1 %1122 }
 0x353   : > { %v1105_v42 = vadd.f32 %v1097_v6, %v1065_v0  ;;  %v1106_v15 = vadd.f32 %v1098_v21, %v1066_v4  ;;  %v1019_v26 = vmul.f32 %v1008_v59, %v2659_v62  ;;  %v1020_v7 = vmul.f32 %v1012_v32, %v2659_v62 }
 0x354   : > { %v1149_v1 = vadd.f32 %v2810_v28, %v2798_v20  ;;  %v1158_v56 = vadd.f32 %v2812_v34, %v2800_v54  ;;  %v1137_v38 = vmul.f32 %v2762_v9, %v1119_v50  ;;  %v1138_v39 = vmul.f32 %v2765_v12, %v1119_v50 }
 0x355   : > { %v1027_v13 = vadd.f32 %v1019_v26, %v987_v11  ;;  %v1028_v35 = vadd.f32 %v1020_v7, %v988_v27  ;;  %v1059_v16 = vmul.f32 %v2747_v8, %v2694_v25  ;;  %v1060_v59 = vmul.f32 %v2750_v33, %v2694_v25 }
 0x356   : > { %v2826_v62 = vadd.f32 %v1137_v38, %v1105_v42  ;;  %v2828_v32 = vadd.f32 %v1138_v39, %v1106_v15  ;;  %v1099_v40 = vmul.f32 %v2756_v36, %v1083_v57  ;;  %v1100_v17 = vmul.f32 %v2759_v37, %v1083_v57 }
 0x357   : > { %v1067_v10 = vadd.f32 %v1059_v16, %v1027_v13  ;;  %v1068_v23 = vadd.f32 %v1060_v59, %v1028_v35  ;;  %v1139_v19 = vmul.f32 %v2762_v9, %v1123_v60  ;;  %v1140_v5 = vmul.f32 %v2765_v12, %v1123_v60  ;;  %v1223_v59 = vpop.permute.xlu1 %1222 }
 0x358   : > { %v1150_v22 = vadd.f32 %v1149_v1, %v2826_v62  ;;  %v1159_v8 = vadd.f32 %v1158_v56, %v2828_v32 }
 0x359   : > { %v1107_v52 = vadd.f32 %v1099_v40, %v1067_v10  ;;  %v1108_v25 = vadd.f32 %v1100_v17, %v1068_v23 }
 0x35b   : > { %v2836_v33 = vadd.f32 %v1139_v19, %v1107_v52  ;;  %v2838_v63 = vadd.f32 %v1140_v5, %v1108_v25 }
 0x35d   : > { %v1151_v36 = vadd.f32 %v1150_v22, %v2836_v33  ;;  %v1160_v37 = vadd.f32 %v1159_v8, %v2838_v63  ;;  %v1243_v22 = vpop.permute.xlu1 %1242 }
 0x35f   : > { %v1152_v41 = vrot.slane %v1151_v36, 4  ;;  %v1161_v30 = vrot.slane %v1160_v37, 4 }
 0x361   : > { %v1153_v31 = vadd.f32 %v1152_v41, %v1151_v36  ;;  %v1162_v9 = vadd.f32 %v1161_v30, %v1160_v37  ;;  %v1227_v37 = vpop.permute.xlu1 %1226  ;;  %v1219_v41 = vpop.permute.xlu0 %1218 }
 0x363   : > { %v1154_v44 = vrot.slane %v1153_v31, 2  ;;  %v1163_v12 = vrot.slane %v1162_v9, 2 }
 0x365   : > { %v1155_v61 = vadd.f32 %v1154_v44, %v1153_v31  ;;  %v1164_v24 = vadd.f32 %v1163_v12, %v1162_v9  ;;  %v1231_v30 = vpop.permute.xlu1 %1230  ;;  %v1247_v31 = vpop.permute.xlu0 %1246 }
 0x367   : > { %v1156_v53 = vrot.slane %v1155_v61, 1  ;;  %v1165_v47 = vrot.slane %v1164_v24, 1 }
 0x369   : > { %v1157_v55 = vadd.f32 %v1156_v53, %v1155_v61  ;;  %v1166_v46 = vadd.f32 %v1165_v47, %v1164_v24 }
 0x36b   : > { %v1167_v51 = vmul.f32 0.03125, %v1157_v55  ;;  %v1168_v48 = vmul.f32 0.03125, %v1166_v46 }
 0x36d   : > { %v1173_v49 = vsub.f32 %v2826_v62, %v1167_v51  ;;  %v1174_v14 = vsub.f32 %v2828_v32, %v1168_v48  ;;  %v1169_v57 = vsub.f32 %v2798_v20, %v1167_v51  ;;  %v1170_v58 = vsub.f32 %v2800_v54, %v1168_v48 }
 0x36e   : > { %v1171_v29 = vsub.f32 %v2810_v28, %v1167_v51  ;;  %v1172_v2 = vsub.f32 %v2812_v34, %v1168_v48  ;;  %v1175_v18 = vsub.f32 %v2836_v33, %v1167_v51  ;;  %v1176_v45 = vsub.f32 %v2838_v63, %v1168_v48 }
 0x36f   : > { %v1177_v43 = vmul.f32 %v1169_v57, %v1169_v57  ;;  %v1178_v50 = vmul.f32 %v1170_v58, %v1170_v58  ;;  %v1181_v6 = vmul.f32 %v1173_v49, %v1173_v49  ;;  %v1182_v21 = vmul.f32 %v1174_v14, %v1174_v14 }
 0x370   : > { %v1179_v0 = vmul.f32 %v1171_v29, %v1171_v29  ;;  %v1180_v4 = vmul.f32 %v1172_v2, %v1172_v2  ;;  %v1183_v42 = vmul.f32 %v1175_v18, %v1175_v18  ;;  %v1184_v15 = vmul.f32 %v1176_v45, %v1176_v45 }
 0x372   : > { %v1185_v11 = vadd.f32 %v1179_v0, %v1177_v43  ;;  %v1194_v27 = vadd.f32 %v1180_v4, %v1178_v50  ;;  %v1251_v50 = vpop.permute.xlu0 %1250  ;;  %v1255_v0 = vpop.permute.xlu1 %1254 }
 0x374   : > { %v1186_v26 = vadd.f32 %v1185_v11, %v1181_v6  ;;  %v1195_v7 = vadd.f32 %v1194_v27, %v1182_v21 }
 0x376   : > { %v1187_v1 = vadd.f32 %v1186_v26, %v1183_v42  ;;  %v1196_v56 = vadd.f32 %v1195_v7, %v1184_v15 }
 0x378   : > { %v1188_v38 = vrot.slane %v1187_v1, 4  ;;  %v1197_v39 = vrot.slane %v1196_v56, 4 }
 0x37a   : > { %v1189_v60 = vadd.f32 %v1188_v38, %v1187_v1  ;;  %v1198_v13 = vadd.f32 %v1197_v39, %v1196_v56  ;;  %v1955_v56 = vld [vmem:[%s3069_s7] sm:$0xff]   ;;  %v1956_v38 = vld [vmem:[%s3069_s7 + $0x8] sm:$0xff]   ;;  %v1957_v39 = vld [vmem:[%s3069_s7 + $0x10] sm:$0xff]  }
 0x37c   : > { %v1190_v35 = vrot.slane %v1189_v60, 2  ;;  %v1199_v16 = vrot.slane %v1198_v13, 2 }
 0x37e   : > { %v1191_v40 = vadd.f32 %v1190_v35, %v1189_v60  ;;  %v1200_v17 = vadd.f32 %v1199_v16, %v1198_v13  ;;  %v1958_v60 = vld [vmem:[%s3069_s7 + $0x18] sm:$0xff]   ;;  %v2186_v13 = vmov 5   ;;  %v2039_v35 = vld [vmem:[%s3065_s3] sm:$0xff]  ;;  %v2040_v16 = vld [vmem:[%s3065_s3 + $0x8] sm:$0xff] }
 0x37f   : > { %1951 = vset.pattern.permute.xlu1 %v2186_v13  ;;  %1952 = vset.pattern.permute.xlu0 %v2186_v13 }
 0x380   : > { %v1192_v10 = vrot.slane %v1191_v40, 1  ;;  %v1201_v23 = vrot.slane %v1200_v17, 1  ;;  %1587 = vperm.xlu1 %1951, %v2039_v35   ;;  %1591 = vperm.xlu0 %1952, %v2040_v16  }
 0x382   : > { %v1193_v19 = vadd.f32 %v1192_v10, %v1191_v40  ;;  %v1202_v5 = vadd.f32 %v1201_v23, %v1200_v17  ;;  %v2042_v40 = vld [vmem:[%s3065_s3 + $0x18] sm:$0xff] }
 0x384   : > { %v1203_v8 = vmul.f32 0.03125, %v1193_v19  ;;  %v1204_v52 = vmul.f32 0.03125, %v1202_v5 }
 0x386   : > { %v1205_v25 = vadd.f32 1e-05, %v1203_v8  ;;  %v1206_v36 = vadd.f32 1e-05, %v1204_v52 }
 0x388   : > { %2003 = vrsqrt.f32 %v1205_v25 }
 0x389   : > { %2005 = vrsqrt.f32 %v1206_v36 }
 0x392   : > { %v2004_v9 = vpop.eup %2003 }
 0x393   : > { %v2006_v44 = vpop.eup %2005  ;;  %v1211_v12 = vmul.f32 %v2004_v9, %v1171_v29  ;;  %v1213_v61 = vmul.f32 %v2004_v9, %v1173_v49  ;;  %v1209_v24 = vmul.f32 %v2004_v9, %v1169_v57  ;;  %v1215_v53 = vmul.f32 %v2004_v9, %v1175_v18 }
 0x394   : > { %v1212_v47 = vmul.f32 %v2006_v44, %v1172_v2  ;;  %v1214_v55 = vmul.f32 %v2006_v44, %v1174_v14  ;;  %v1210_v46 = vmul.f32 %v2006_v44, %v1170_v58  ;;  %v1216_v51 = vmul.f32 %v2006_v44, %v1176_v45 }
 0x395   : > { %v1235_v48 = vmul.f32 %v1223_v59, %v1211_v12  ;;  %v1233_v43 = vmul.f32 %v1219_v41, %v1209_v24  ;;  %v1237_v27 = vmul.f32 %v1227_v37, %v1213_v61  ;;  %v1239_v15 = vmul.f32 %v1231_v30, %v1215_v53 }
 0x396   : > { %v1236_v4 = vmul.f32 %v1223_v59, %v1212_v47  ;;  %v1238_v6 = vmul.f32 %v1227_v37, %v1214_v55  ;;  %v1234_v21 = vmul.f32 %v1219_v41, %v1210_v46  ;;  %v1240_v11 = vmul.f32 %v1231_v30, %v1216_v51  ;;  %v2041_v59 = vld [vmem:[%s3065_s3 + $0x10] sm:$0xff] }
 0x397   : > { %v1257_v42 = vadd.f32 %v1243_v22, %v1233_v43  ;;  %v1259_v26 = vadd.f32 %v1247_v31, %v1235_v48  ;;  %v1261_v58 = vadd.f32 %v1251_v50, %v1237_v27  ;;  %v1263_v45 = vadd.f32 %v1255_v0, %v1239_v15  ;;  %1595 = vperm.xlu1 %1951, %v2041_v59  }
 0x398   : > { %v1258_v29 = vadd.f32 %v1243_v22, %v1234_v21  ;;  %v1260_v49 = vadd.f32 %v1247_v31, %v1236_v4  ;;  %v1262_v57 = vadd.f32 %v1251_v50, %v1238_v6  ;;  %v1264_v18 = vadd.f32 %v1255_v0, %v1240_v11 }
 0x399   : > { %v1273_v2 = vpack.c.bf16 %v1259_v26, %v1257_v42  ;;  %v1275_v1 = vpack.c.bf16 %v1263_v45, %v1261_v58 }
 0x39a   : > { %v1274_v14 = vpack.c.bf16 %v1260_v49, %v1258_v29  ;;  %v1276_v7 = vpack.c.bf16 %v1264_v18, %v1262_v57 }
 0x39b   : > { %1599 = vperm.xlu1 %1951, %v2042_v40  }
 0x39c   : > { %1357 = vmatprep.subr.bf16.mxu0 %v1274_v14 }
 0x39d   : > { %1358 = vmatpush1.bf16.msra.mxu0 %v1273_v2 }
 0x39e   : > { %1359 = vmatprep.subr.bf16.mxu0 %v1276_v7 }
 0x3a1   : > { %1360 = vmatpush1.bf16.msra.mxu0 %v1275_v1 }
 0x3a4   : > { %1818 = vmatmul.mubr.msk.bf16.vlgmr.msra.gmra.mrb[4].mxu0 %vm555_vm0, %v1955_v56 }
 0x3a5   : > { %1399 = vmatprep.mubr.bf16.mxu0 %v2175_v3 }
 0x3ac   : > { %1819 = vmatmul.mubr.msk.bf16.gmra.mrb[8].mxu0 %vm555_vm0, %v1956_v38 }
 0x3ad   : > { %1409 = vmatprep.mubr.bf16.mxu0 %v2175_v3 }
 0x3af   : > { %v1288_v17 = vpop.permute.xlu0 %1287 }
 0x3b0   : > { %v1293_v23 = vpop.permute.xlu1 %1292 }
 0x3b3   : > { %v1303_v4 = vpop.permute.xlu0 %1302 }
 0x3b4   : > { %1820 = vmatmul.mubr.msk.bf16.gmra.mrb[12].mxu0 %vm555_vm0, %v1957_v39  ;;  %v1298_v12 = vpop.permute.xlu1 %1297 }
 0x3b5   : > { %1419 = vmatprep.mubr.bf16.mxu0 %v2175_v3 }
 0x3b8   : > { %v1308_v13 = vpop.permute.xlu1 %1307 }
 0x3bc   : > { %1821 = vmatmul.mubr.msk.bf16.gmra.mrb[16].mxu0 %vm555_vm0, %v1958_v60 }
 0x477   : > { %v1391_v10 = vpop.f32.mrb[4].mxu0 }
 0x478   : > { %v2881_v19 = vadd.f32 %v1391_v10, %v1288_v17  ;;  %v1393_v5 = vpop.f32.mrb[5].mxu0 }
 0x479   : > { %v2883_v22 = vadd.f32 %v1393_v5, %v1288_v17  ;;  %v1395_v8 = vpop.f32.mrb[6].mxu0  ;;  %v1313_v5 = vpop.permute.xlu0 %1312 }
 0x47a   : > { %v1430_v52 = vmul.f32 %v2881_v19, %v2881_v19  ;;  %v2887_v25 = vadd.f32 %v1395_v8, %v1293_v23  ;;  %v1397_v36 = vpop.f32.mrb[7].mxu0 }
 0x47b   : > { %v1431_v37 = vmul.f32 %v2883_v22, %v2883_v22  ;;  %v2891_v41 = vadd.f32 %v1397_v36, %v1293_v23 }
 0x47c   : > { %v1446_v30 = vmul.f32 %v1430_v52, %v2881_v19  ;;  %v1432_v31 = vmul.f32 %v2887_v25, %v2887_v25 }
 0x47d   : > { %v1447_v9 = vmul.f32 %v1431_v37, %v2883_v22  ;;  %v1433_v44 = vmul.f32 %v2891_v41, %v2891_v41 }
 0x47e   : > { %v1462_v61 = vmul.f32 0.044715, %v1446_v30  ;;  %v1448_v24 = vmul.f32 %v1432_v31, %v2887_v25 }
 0x47f   : > { %v1463_v53 = vmul.f32 0.044715, %v1447_v9  ;;  %v1449_v47 = vmul.f32 %v1433_v44, %v2891_v41  ;;  %v1401_v55 = vpop.f32.mrb[8].mxu0 }
 0x480   : > { %v1478_v46 = vadd.f32 %v1462_v61, %v2881_v19  ;;  %v1464_v51 = vmul.f32 0.044715, %v1448_v24  ;;  %v2902_v48 = vadd.f32 %v1401_v55, %v1298_v12  ;;  %v1403_v43 = vpop.f32.mrb[9].mxu0 }
 0x481   : > { %v1479_v50 = vadd.f32 %v1463_v53, %v2883_v22  ;;  %v1465_v0 = vmul.f32 0.044715, %v1449_v47  ;;  %v2905_v6 = vadd.f32 %v1403_v43, %v1298_v12  ;;  %v1405_v21 = vpop.f32.mrb[10].mxu0 }
 0x482   : > { %v1494_v11 = vmul.f32 0.7978846, %v1478_v46  ;;  %v1480_v27 = vadd.f32 %v1464_v51, %v2887_v25  ;;  %v1434_v42 = vmul.f32 %v2902_v48, %v2902_v48  ;;  %v2910_v15 = vadd.f32 %v1405_v21, %v1303_v4  ;;  %v1407_v26 = vpop.f32.mrb[11].mxu0 }
 0x483   : > { %v1495_v29 = vmul.f32 0.7978846, %v1479_v50  ;;  %v1481_v49 = vadd.f32 %v1465_v0, %v2891_v41  ;;  %v1435_v57 = vmul.f32 %v2905_v6, %v2905_v6  ;;  %v2915_v18 = vadd.f32 %v1407_v26, %v1303_v4 }
 0x484   : > { %2007 = vtanh.f32 %v1494_v11  ;;  %v1496_v2 = vmul.f32 0.7978846, %v1480_v27  ;;  %v1450_v14 = vmul.f32 %v1434_v42, %v2902_v48  ;;  %v1436_v58 = vmul.f32 %v2910_v15, %v2910_v15  ;;  %v1318_v27 = vpop.permute.xlu1 %1317 }
 0x485   : > { %2009 = vtanh.f32 %v1495_v29  ;;  %v1497_v45 = vmul.f32 0.7978846, %v1481_v49  ;;  %v1451_v7 = vmul.f32 %v1435_v57, %v2905_v6  ;;  %v1437_v1 = vmul.f32 %v2915_v18, %v2915_v18 }
 0x486   : > { %v1466_v56 = vmul.f32 0.044715, %v1450_v14  ;;  %v1452_v38 = vmul.f32 %v1436_v58, %v2910_v15  ;;  %2011 = vtanh.f32 %v1496_v2 }
 0x487   : > { %v1467_v39 = vmul.f32 0.044715, %v1451_v7  ;;  %v1453_v60 = vmul.f32 %v1437_v1, %v2915_v18  ;;  %v1411_v35 = vpop.f32.mrb[12].mxu0  ;;  %2013 = vtanh.f32 %v1497_v45  ;;  %v1323_v7 = vpop.permute.xlu0 %1322 }
 0x488   : > { %v1482_v16 = vadd.f32 %v1466_v56, %v2902_v48  ;;  %v1468_v59 = vmul.f32 0.044715, %v1452_v38  ;;  %v2926_v40 = vadd.f32 %v1411_v35, %v1308_v13  ;;  %v1413_v17 = vpop.f32.mrb[13].mxu0 }
 0x489   : > { %v1483_v10 = vadd.f32 %v1467_v39, %v2905_v6  ;;  %v1469_v23 = vmul.f32 0.044715, %v1453_v60  ;;  %v2929_v8 = vadd.f32 %v1413_v17, %v1308_v13  ;;  %v1415_v52 = vpop.f32.mrb[14].mxu0 }
 0x48a   : > { %v1498_v36 = vmul.f32 0.7978846, %v1482_v16  ;;  %v1484_v37 = vadd.f32 %v1468_v59, %v2910_v15  ;;  %v1438_v30 = vmul.f32 %v2926_v40, %v2926_v40  ;;  %v2934_v31 = vadd.f32 %v1415_v52, %v1313_v5  ;;  %v1417_v9 = vpop.f32.mrb[15].mxu0 }
 0x48b   : > { %v1499_v44 = vmul.f32 0.7978846, %v1483_v10  ;;  %v1485_v12 = vadd.f32 %v1469_v23, %v2915_v18  ;;  %v1439_v61 = vmul.f32 %v2929_v8, %v2929_v8  ;;  %v2939_v24 = vadd.f32 %v1417_v9, %v1313_v5 }
 0x48c   : > { %2015 = vtanh.f32 %v1498_v36  ;;  %v1500_v53 = vmul.f32 0.7978846, %v1484_v37  ;;  %v1454_v47 = vmul.f32 %v1438_v30, %v2926_v40  ;;  %v1440_v55 = vmul.f32 %v2934_v31, %v2934_v31 }
 0x48d   : > { %2017 = vtanh.f32 %v1499_v44  ;;  %v1501_v46 = vmul.f32 0.7978846, %v1485_v12  ;;  %v1455_v51 = vmul.f32 %v1439_v61, %v2929_v8  ;;  %v1441_v43 = vmul.f32 %v2939_v24, %v2939_v24 }
 0x48e   : > { %v2008_v50 = vpop.eup %2007  ;;  %2019 = vtanh.f32 %v1500_v53  ;;  %v1470_v0 = vmul.f32 0.044715, %v1454_v47  ;;  %v1456_v4 = vmul.f32 %v1440_v55, %v2934_v31 }
 0x48f   : > { %v2010_v21 = vpop.eup %2009  ;;  %v1526_v11 = vadd.f32 1.0, %v2008_v50  ;;  %2021 = vtanh.f32 %v1501_v46  ;;  %v1471_v42 = vmul.f32 0.044715, %v1455_v51  ;;  %v1457_v26 = vmul.f32 %v1441_v43, %v2939_v24  ;;  %v1421_v29 = vpop.f32.mrb[16].mxu0 }
 0x490   : > { %v1486_v49 = vadd.f32 %v1470_v0, %v2926_v40  ;;  %v1472_v57 = vmul.f32 0.044715, %v1456_v4  ;;  %v2950_v2 = vadd.f32 %v1421_v29, %v1318_v27  ;;  %v1423_v14 = vpop.f32.mrb[17].mxu0  ;;  %v1527_v58 = vadd.f32 1.0, %v2010_v21  ;;  %v2012_v60 = vpop.eup %2011 }
 0x491   : > { %v1542_v45 = vmul.f32 0.5, %v1526_v11  ;;  %v1487_v1 = vadd.f32 %v1471_v42, %v2929_v8  ;;  %v1473_v56 = vmul.f32 0.044715, %v1457_v26  ;;  %v2953_v38 = vadd.f32 %v1423_v14, %v1318_v27  ;;  %v1425_v39 = vpop.f32.mrb[18].mxu0  ;;  %v2014_v10 = vpop.eup %2013 }
 0x492   : > { %v1502_v13 = vmul.f32 0.7978846, %v1486_v49  ;;  %v1488_v35 = vadd.f32 %v1472_v57, %v2934_v31  ;;  %v1442_v16 = vmul.f32 %v2950_v2, %v2950_v2  ;;  %v2958_v59 = vadd.f32 %v1425_v39, %v1323_v7  ;;  %v1427_v17 = vpop.f32.mrb[19].mxu0 }
 0x493   : > { %v1558_v23 = vmul.f32 %v1542_v45, %v2881_v19  ;;  %v1503_v5 = vmul.f32 0.7978846, %v1487_v1  ;;  %v1489_v52 = vadd.f32 %v1473_v56, %v2939_v24  ;;  %v1443_v36 = vmul.f32 %v2953_v38, %v2953_v38 }
 0x494   : > { %2023 = vtanh.f32 %v1502_v13  ;;  %v1504_v37 = vmul.f32 0.7978846, %v1488_v35  ;;  %v1458_v30 = vmul.f32 %v1442_v16, %v2950_v2  ;;  %v1444_v9 = vmul.f32 %v2958_v59, %v2958_v59 }
 0x495   : > { %2025 = vtanh.f32 %v1503_v5  ;;  %v1505_v44 = vmul.f32 0.7978846, %v1489_v52  ;;  %v1459_v12 = vmul.f32 %v1443_v36, %v2953_v38  ;;  %v2968_v61 = vadd.f32 %v1427_v17, %v1323_v7 }
 0x496   : > { %v2016_v19 = vpop.eup %2015  ;;  %2027 = vtanh.f32 %v1504_v37  ;;  %v1474_v53 = vmul.f32 0.044715, %v1458_v30  ;;  %v1460_v47 = vmul.f32 %v1444_v9, %v2958_v59  ;;  %v1529_v55 = vadd.f32 1.0, %v2014_v10 }
 0x497   : > { %v2018_v46 = vpop.eup %2017  ;;  %2029 = vtanh.f32 %v1505_v44  ;;  %v1475_v51 = vmul.f32 0.044715, %v1459_v12  ;;  %v1445_v43 = vmul.f32 %v2968_v61, %v2968_v61  ;;  %v1543_v50 = vmul.f32 0.5, %v1527_v58 }
 0x498   : > { %v2020_v0 = vpop.eup %2019  ;;  %v1490_v4 = vadd.f32 %v1474_v53, %v2950_v2  ;;  %v1476_v21 = vmul.f32 0.044715, %v1460_v47  ;;  %v1545_v11 = vmul.f32 0.5, %v1529_v55  ;;  %v1528_v27 = vadd.f32 1.0, %v2012_v60 }
 0x499   : > { %v2022_v42 = vpop.eup %2021  ;;  %v1532_v26 = vadd.f32 1.0, %v2020_v0  ;;  %v1491_v29 = vadd.f32 %v1475_v51, %v2953_v38  ;;  %v1461_v49 = vmul.f32 %v1445_v43, %v2968_v61  ;;  %v1559_v57 = vmul.f32 %v1543_v50, %v2883_v22 }
 0x49a   : > { %v1506_v14 = vmul.f32 0.7978846, %v1490_v4  ;;  %v1492_v45 = vadd.f32 %v1476_v21, %v2958_v59  ;;  %v1561_v7 = vmul.f32 %v1545_v11, %v2891_v41  ;;  %v1544_v58 = vmul.f32 0.5, %v1528_v27 }
 0x49b   : > { %v1548_v1 = vmul.f32 0.5, %v1532_v26  ;;  %v1507_v56 = vmul.f32 0.7978846, %v1491_v29  ;;  %v1477_v39 = vmul.f32 0.044715, %v1461_v49  ;;  %v1531_v13 = vadd.f32 1.0, %v2018_v46 }
 0x49c   : > { %2031 = vtanh.f32 %v1506_v14  ;;  %v1508_v60 = vmul.f32 0.7978846, %v1492_v45  ;;  %v1579_v35 = vpack.c.bf16 %v1561_v7, %v1559_v57  ;;  %v1560_v16 = vmul.f32 %v1544_v58, %v2887_v25 }
 0x49d   : > { %2033 = vtanh.f32 %v1507_v56  ;;  %v1493_v17 = vadd.f32 %v1477_v39, %v2968_v61  ;;  %v1533_v10 = vadd.f32 1.0, %v2022_v42  ;;  %v1547_v52 = vmul.f32 0.5, %v1531_v13 }
 0x49e   : > { %v2024_v22 = vpop.eup %2023  ;;  %2035 = vtanh.f32 %v1508_v60  ;;  %1619 = vmatprep.subr.bf16.mxu1 %v1579_v35  ;;  %v1578_v5 = vpack.c.bf16 %v1560_v16, %v1558_v23  ;;  %v1530_v41 = vadd.f32 1.0, %v2016_v19  ;;  %v1564_v12 = vmul.f32 %v1548_v1, %v2910_v15  ;;  %v1959_v16 = vld [vmem:[%s3071_s9] sm:$0xff]  }
 0x49f   : > { %v2026_v36 = vpop.eup %2025  ;;  %v1534_v37 = vadd.f32 1.0, %v2024_v22  ;;  %v1509_v30 = vmul.f32 0.7978846, %v1493_v17  ;;  %v1549_v9 = vmul.f32 0.5, %v1533_v10  ;;  %v1563_v25 = vmul.f32 %v1547_v52, %v2905_v6 }
 0x4a0   : > { %v2028_v44 = vpop.eup %2027  ;;  %1620 = vmatpush1.bf16.msra.mxu1 %v1578_v5  ;;  %v1546_v53 = vmul.f32 0.5, %v1530_v41  ;;  %v1535_v47 = vadd.f32 1.0, %v2026_v36 }
 0x4a1   : > { %v2030_v55 = vpop.eup %2029  ;;  %v1550_v46 = vmul.f32 0.5, %v1534_v37  ;;  %v1536_v51 = vadd.f32 1.0, %v2028_v44  ;;  %2037 = vtanh.f32 %v1509_v30  ;;  %v1565_v23 = vmul.f32 %v1549_v9, %v2915_v18 }
 0x4a2   : > { %v1562_v19 = vmul.f32 %v1546_v53, %v2902_v48  ;;  %v1537_v43 = vadd.f32 1.0, %v2030_v55  ;;  %v1551_v50 = vmul.f32 0.5, %v1535_v47 }
 0x4a3   : > { %v1552_v0 = vmul.f32 0.5, %v1536_v51  ;;  %v1581_v4 = vpack.c.bf16 %v1565_v23, %v1563_v25  ;;  %v1566_v15 = vmul.f32 %v1550_v46, %v2926_v40 }
 0x4a4   : > { %v1580_v21 = vpack.c.bf16 %v1564_v12, %v1562_v19  ;;  %v1553_v11 = vmul.f32 0.5, %v1537_v43  ;;  %v1567_v42 = vmul.f32 %v1551_v50, %v2929_v8 }
 0x4a5   : > { %v1568_v6 = vmul.f32 %v1552_v0, %v2934_v31  ;;  %1621 = vmatprep.subr.bf16.mxu1 %v1581_v4 }
 0x4a6   : > { %v2032_v27 = vpop.eup %2031  ;;  %1622 = vmatpush1.bf16.msra.mxu1 %v1580_v21  ;;  %v1569_v26 = vmul.f32 %v1553_v11, %v2939_v24 }
 0x4a7   : > { %v2034_v18 = vpop.eup %2033  ;;  %v1538_v29 = vadd.f32 1.0, %v2032_v27  ;;  %v1582_v48 = vpack.c.bf16 %v1568_v6, %v1566_v15 }
 0x4a8   : > { %v2036_v49 = vpop.eup %2035  ;;  %v1583_v57 = vpack.c.bf16 %v1569_v26, %v1567_v42  ;;  %v1539_v14 = vadd.f32 1.0, %v2034_v18 }
 0x4a9   : > { %v1554_v45 = vmul.f32 0.5, %v1538_v29  ;;  %v1540_v7 = vadd.f32 1.0, %v2036_v49 }
 0x4aa   : > { %1623 = vmatprep.subr.bf16.mxu1 %v1583_v57  ;;  %v1555_v1 = vmul.f32 0.5, %v1539_v14 }
 0x4ab   : > { %v2038_v58 = vpop.eup %2037  ;;  %v1556_v40 = vmul.f32 0.5, %v1540_v7  ;;  %1624 = vmatpush1.bf16.msra.mxu1 %v1582_v48  ;;  %v1570_v56 = vmul.f32 %v1554_v45, %v2950_v2  ;;  %v1960_v2 = vld [vmem:[%s3071_s9 + $0x8] sm:$0xff]  }
 0x4ac   : > { %v1541_v31 = vadd.f32 1.0, %v2038_v58  ;;  %v1571_v13 = vmul.f32 %v1555_v1, %v2953_v38  ;;  %v1588_v38 = vpop.permute.xlu1 %1587 }
 0x4ad   : > { %v1572_v8 = vmul.f32 %v1556_v40, %v2958_v59 }
 0x4ae   : > { %v1557_v24 = vmul.f32 0.5, %v1541_v31 }
 0x4af   : > { %v1584_v39 = vpack.c.bf16 %v1572_v8, %v1570_v56 }
 0x4b0   : > { %v1573_v60 = vmul.f32 %v1557_v24, %v2968_v61  ;;  %v1592_v61 = vpop.permute.xlu0 %1591 }
 0x4b2   : > { %v1585_v35 = vpack.c.bf16 %v1573_v60, %v1571_v13 }
 0x4b4   : > { %1625 = vmatprep.subr.bf16.mxu1 %v1585_v35 }
 0x4b5   : > { %1626 = vmatpush1.bf16.msra.mxu1 %v1584_v39 }
 0x4b8   : > { %1824 = vmatmul.mubr.msk.bf16.vlgmr.msra.gmra.mrb[4].mxu1 %vm1612_vm3, %v1959_v16 }
 0x4b9   : > { %1661 = vmatprep.mubr.bf16.mxu1 %v2175_v3  ;;  %v1596_v3 = vpop.permute.xlu1 %1595 }
 0x4c0   : > { %1825 = vmatmul.mubr.msk.bf16.gmra.mrb[8].mxu1 %vm1612_vm3, %v1960_v2 }
 0x58b   : > { %v1653_v59 = vpop.f32.mrb[4].mxu1 }
 0x58c   : > { %v1654_v17 = vadd.f32 %v1653_v59, %v1588_v38  ;;  %v1655_v10 = vpop.f32.mrb[5].mxu1 }
 0x58d   : > { %v1656_v22 = vadd.f32 %v1655_v10, %v1588_v38  ;;  %v1657_v5 = vpop.f32.mrb[6].mxu1 }
 0x58e   : > { %v1672_v52 = vadd.f32 %v1654_v17, %v2798_v20  ;;  %v1658_v41 = vadd.f32 %v1657_v5, %v1592_v61  ;;  %v1659_v36 = vpop.f32.mrb[7].mxu1  ;;  %v1600_v20 = vpop.permute.xlu1 %1599 }
 0x58f   : > { %v1673_v37 = vadd.f32 %v1656_v22, %v2800_v54  ;;  %v1660_v30 = vadd.f32 %v1659_v36, %v1592_v61 }
 0x590   : > { %1680 = vst [vmem:[%s393_s28] sm:$0xff] %v1672_v52  ;;  %v1674_v9 = vadd.f32 %v1658_v41, %v2810_v28 }
 0x591   : > { %1681 = vst [vmem:[%s393_s28 + $0x8] sm:$0xff] %v1673_v37  ;;  %v1675_v44 = vadd.f32 %v1660_v30, %v2812_v34 }
 0x592   : > { %1682 = vst [vmem:[%s393_s28 + $0x10] sm:$0xff] %v1674_v9 }
 0x593   : > { %1683 = vst [vmem:[%s393_s28 + $0x18] sm:$0xff] %v1675_v44  ;;  %v1663_v12 = vpop.f32.mrb[8].mxu1 }
 0x594   : > { %v1664_v25 = vadd.f32 %v1663_v12, %v1596_v3  ;;  %v1665_v53 = vpop.f32.mrb[9].mxu1 }
 0x595   : > { %v1666_v47 = vadd.f32 %v1665_v53, %v1596_v3  ;;  %v1667_v55 = vpop.f32.mrb[10].mxu1 }
 0x596   : > { %v1676_v54 = vadd.f32 %v1664_v25, %v2826_v62  ;;  %v1668_v46 = vadd.f32 %v1667_v55, %v1600_v20  ;;  %v1669_v51 = vpop.f32.mrb[11].mxu1 }
 0x597   : > { %v1677_v28 = vadd.f32 %v1666_v47, %v2828_v32  ;;  %v1670_v23 = vadd.f32 %v1669_v51, %v1600_v20 }
 0x598   : > { %1684 = vst [vmem:[%s393_s28 + $0x20] sm:$0xff] %v1676_v54  ;;  %v1678_v34 = vadd.f32 %v1668_v46, %v2836_v33 }
 0x599   : > { %1685 = vst [vmem:[%s393_s28 + $0x28] sm:$0xff] %v1677_v28  ;;  %v1679_v19 = vadd.f32 %v1670_v23, %v2838_v63 }
 0x59a   : > { %1686 = vst [vmem:[%s393_s28 + $0x30] sm:$0xff] %v1678_v34 }
 0x59b   : > { %1687 = vst [vmem:[%s393_s28 + $0x38] sm:$0xff] %v1679_v19 }
 0x59c   : > { %2112 = shalt.err (!%p2109_p11)
}
 0x59d   : > { %s2113_s29 = scalar_lea.hbm %s3017_s24, 1024  ;;  %s2117_s19 = scalar_lea.hbm %s3072_s10, 2048 }
 0x59e   : > { %p2114_p13 = scmp.ne.s32.totalorder %s3017_s24, %s2113_s29  ;;  %p2118_p6 = scmp.lt.u32.totalorder %s3017_s24, %s3072_s10 }
 0x59f   : > { %p2119_p9 = scmp.lt.u32.totalorder %s2117_s19, %s2113_s29  ;;  %p2121_p12 = scmp.lt.u32.totalorder %s2113_s29, %s3017_s24 }
 0x5a0   : > { %p2115_p5 = pnand %p2114_p13, %p3093_p1 }
 0x5a1   : > { %p2120_p10 = por %p2119_p9, %p2118_p6 }
 0x5a2   : > { %p2116_p0 = pneg %p2115_p5 }
 0x5a3   : > { %p2122_p2 = por %p2121_p12, %p2120_p10 }
 0x5a5   : > { %p2123_p3 = pnand %p2122_p2, %p2116_p0 }
 0x5a7   : > { %2126 = shalt.err (!%p2123_p3)
}
 0x5a8   : > { %s2188_s11 = smov 256   ;;  %s2189_s12 = smov 16  }
 0x5a9   : > { %1852 = dma.vmem_to_hbm [thread:$0]  (%p3093_p1), %s3010_s30, 1024, %s3017_s24, %s3021_s17, %s2188_s11, %s2188_s11, %s2189_s12  }
 0x5aa PF: > { %s3094_s22 = sld [smem:[#allocation14_spill]]  ;;  %p1869_p4 = scmp.ge.s32.totalorder %s2169_s16, 2 }
 0x5ab   : > { %s1717_s18 = sand.u32 1, %s2157_s13  }
 0x5ac   : > { %s1718_s20 = scalar_lea.sflag [#allocation4], %s1717_s18 }
 0x5b0   : > { %p3095_p7 = scmp.ne.s32.totalorder %s3094_s22, 0 }
 0x5b2   : > { %p1862_p8 = pnand %p1869_p4, %p3095_p7 }
 0x5b4   : > { %2152 = dma.done.wait (!%p1862_p8), %s1718_s20, 1024  }
 0x5b5   : > { %2154 = vsyncadd (!%p1862_p8), %s1718_s20, 4294966272  ;;  %s3096_s16 = sld [smem:[#allocation12_spill]]  ;;  %s3097_s21 = sld [smem:[#allocation11_spill]] }
 0x5b6   : > { %s3098_s15 = sld [smem:[#allocation13_spill]]  ;;  %s3099_s13 = smov %s2161_s14 }
 0x5bb   : > { %p22_p11 = scmp.ge.s32.totalorder %s3096_s16, 4   ;;  %s3100_s14 = smov %s3097_s21 }
 0x5bd   :  { %24 = sbr.rel (!%p22_p11) target bundleno = 5 (0x5), region = 107 }
 0x5c4   :  { %1723 = vsyncpa [#allocation3], 1 }
 0x5c5   :  { %1725 = vsyncpa [#allocation3 + $0x1], 1 }
 0x5c6   :  { %1726 = vsyncpa [#allocation6], 1 }
 0x5c7   :  { %1727 = vsyncpa [#allocation4], 1 }
 0x5c8   :  { %1729 = vsyncpa [#allocation4 + $0x1], 1 }

</bundles_post_ra>
